<compile_context>
chip_gen: v7x
topology: tpu7x:2x2x1
jax: 0.10.0
libtpu: 0.0.40
codegen_flags: <defaults>
</compile_context>

<pallas_src>
import functools

import jax
import jax.numpy as jnp
from jax import lax
from jax.experimental import pallas as pl
from jax.experimental.pallas import tpu as pltpu


def _round_up(v, m):
    return (v + m - 1) // m * m


# ------------------------------ Pallas kernel ------------------------------ #

def _basic_block3d_kernel(x_ref, w1_ref, b1_ref, w2_ref, b2_ref, mask_ref,
                          o_ref, h_ref, xcol_ref, *, taps, c0, length,
                          lane_tile, ng):
    """Fused conv1+BN1+ReLU+conv2+BN2+residual+ReLU for one batch element.

    x_ref   : (1, C, P)        f32, zero-padded flattened volume (lane-aligned)
    w1_ref  : (ng, C, gt*C)    bf16, BN1 scale folded, tap-major columns
    b1_ref  : (C, 1)           f32, BN1 shift
    w2_ref  : (ng, C, gt*C)    bf16, BN2 scale folded
    b2_ref  : (C, 1)           f32, BN2 shift
    mask_ref: (1, length)      f32, 1.0 at true interior positions of the slab
    o_ref   : (1, C, length)   bf16 output slab (padded coords c0..c0+length)
    h_ref   : (C, P)           f32 scratch: relu(bn1(conv1)) with zero halo
    xcol_ref: (gt*C, lane_tile) f32 scratch: stacked-K conv operand
    """
    c = x_ref.shape[1]                       # inplanes == planes (no downsample)
    p_tot = h_ref.shape[1]
    gt = len(taps) // ng                     # taps per stacked-K group
    n_tiles = length // lane_tile

    # Zero only the halo strips of the intermediate (conv2's implicit padding).
    # The slab body [c0, c0+length) is fully overwritten below and the interior
    # mask zeroes wrap positions, so no full (C, P) memset is needed.
    h_ref[:, :c0] = jnp.zeros((c, c0), h_ref.dtype)
    h_ref[:, c0 + length:] = jnp.zeros((c, p_tot - c0 - length), h_ref.dtype)

    def conv_tile(read_slice, w_ref, s):
        """3x3x3 conv over one lane tile as `ng` stacked-K MXU matmuls."""
        acc = None
        for g in range(ng):
            # Build the stacked-K operand once per tile: rows = (tap, channel).
            for k, off in enumerate(taps[g * gt:(g + 1) * gt]):
                xcol_ref[k * c:(k + 1) * c, :] = read_slice(off + s)
            part = jnp.dot(w_ref[g], xcol_ref[...].astype(jnp.bfloat16),
                           preferred_element_type=jnp.float32)
            acc = part if acc is None else acc + part
        return acc

    x_slice = lambda lo: x_ref[0, :, lo:lo + lane_tile]
    h_slice = lambda lo: h_ref[:, lo:lo + lane_tile]

    # ---- stage 1: conv1 (BN1 scale folded) + shift + ReLU -> f32 scratch -----
    for tix in range(n_tiles):
        s = tix * lane_tile
        acc = conv_tile(x_slice, w1_ref, s)
        hval = jnp.maximum(acc + b1_ref[...], 0.0) * mask_ref[:, s:s + lane_tile]
        h_ref[:, c0 + s:c0 + s + lane_tile] = hval          # aligned slab store

    # ---- stage 2: conv2 (BN2 scale folded) + shift + residual + ReLU ---------
    for tix in range(n_tiles):
        s = tix * lane_tile
        acc2 = conv_tile(h_slice, w2_ref, s)
        identity = x_ref[0, :, c0 + s:c0 + s + lane_tile]   # exact f32 residual
        out = jnp.maximum(acc2 + b2_ref[...] + identity, 0.0)
        o_ref[0, :, s:s + lane_tile] = out.astype(o_ref.dtype)


# ------------------------------ JAX-side glue ------------------------------ #

def _fold_bn(gamma, beta, mean, var, eps=1e-5):
    scale = gamma / jnp.sqrt(var + eps)          # f32 fold (no bf16 here)
    shift = beta - mean * scale
    return scale, shift


def _prep_weights(w_oidhw, gamma, beta, mean, var, ng, eps=1e-5):
    """Fold BN scale into conv weights (f32), cast bf16, stacked-K layout.

    Returns (w_eff OIDHW bf16, w_grouped (ng, Cout, (27//ng)*Cin) bf16, shift).
    Column index within a group = local_tap*Cin + cin, matching the order the
    kernel writes the stacked operand.
    """
    scale, shift = _fold_bn(gamma, beta, mean, var, eps)
    cout, cin = w_oidhw.shape[:2]
    w_eff = (w_oidhw * scale[:, None, None, None, None]).astype(jnp.bfloat16)
    gt = 27 // ng
    # (Cout, Cin, kd, kh, kw) -> (Cout, kd, kh, kw, Cin) -> (Cout, 27*Cin)
    w_k = jnp.transpose(w_eff, (0, 2, 3, 4, 1)).reshape(cout, 27 * cin)
    w_g = jnp.transpose(w_k.reshape(cout, ng, gt * cin), (1, 0, 2))
    return w_eff, w_g, shift.reshape(cout, 1).astype(jnp.float32)


def _pick_num_groups(c):
    # Group the 27 taps so the stacked-K VMEM operand stays a few MiB per lane
    # tile while K = (27//ng)*C still fills the MXU (K >= 128/256).
    if c <= 96:
        return 1
    if c <= 256:
        return 3
    return 9


@jax.jit
def basic_block3d_forward(x, params):
    """BasicBlock3d forward (inference BN). x: (N, C, T, H, W) float32 NCDHW."""
    n, cin, t, h, w = x.shape
    cmid = params["conv1_w"].shape[0]
    cout = params["conv2_w"].shape[0]
    assert cin == cmid == cout, "identity residual needs inplanes == planes"

    tp, hp, wp = t + 2, h + 2, w + 2
    p_vol = tp * hp * wp                               # zero-padded flat volume
    raw_c0 = hp * wp + wp + 1                          # flat index of (1,1,1)
    raw_len = (t - 1) * hp * wp + (h - 1) * wp + w     # contiguous interior slab
    front = (-raw_c0) % 128                            # align slab start to lanes
    c0 = front + raw_c0                                # multiple of 128
    lane_tile = min(512, _round_up(raw_len, 128))      # 128-aligned lane tiles
    n_tiles = (raw_len + lane_tile - 1) // lane_tile
    length = n_tiles * lane_tile                       # multiple of 128
    p_tot = _round_up(max(front + p_vol, c0 + length + raw_c0), 128)
    taps = tuple(front + kd * hp * wp + kh * wp + kw
                 for kd in range(3) for kh in range(3) for kw in range(3))

    ng = _pick_num_groups(cin)
    gt = 27 // ng
    _, w1_g, shift1 = _prep_weights(params["conv1_w"], params["bn1_gamma"],
                                    params["bn1_beta"], params["bn1_mean"],
                                    params["bn1_var"], ng)
    _, w2_g, shift2 = _prep_weights(params["conv2_w"], params["bn2_gamma"],
                                    params["bn2_beta"], params["bn2_mean"],
                                    params["bn2_var"], ng)

    # Zero-padded, channel-major, flattened input, kept in f32 (the kernel
    # casts the MXU operand to bf16 in-VMEM; f32 x makes the residual exact).
    x_pad = jnp.pad(x, ((0, 0), (0, 0), (1, 1), (1, 1), (1, 1)))
    x_flat = jnp.pad(x_pad.reshape(n, cin, p_vol),
                     ((0, 0), (0, 0), (front, p_tot - front - p_vol)))

    # Interior mask: 1.0 at true interior positions of the contiguous slab.
    pc = raw_c0 + jnp.arange(length)
    td = pc // (hp * wp)
    rem = pc % (hp * wp)
    hd = rem // wp
    wd = rem % wp
    interior = ((td >= 1) & (td <= t) & (hd >= 1) & (hd <= h)
                & (wd >= 1) & (wd <= w))
    mask = interior.astype(jnp.float32).reshape(1, length)

    kernel = functools.partial(_basic_block3d_kernel, taps=taps, c0=c0,
                               length=length, lane_tile=lane_tile, ng=ng)

    # Raise the scoped-VMEM limit only when the working set actually needs it.
    vmem_bytes = (2 * cin * p_tot * 4 + 2 * cout * length * 2
                  + cmid * p_tot * 4 + gt * cin * lane_tile * 4
                  + 27 * cin * (cmid + cout) * 2 + length * 4)
    cparams = dict(dimension_semantics=("parallel",))
    if vmem_bytes > 12 * 1024 * 1024:
        cparams["vmem_limit_bytes"] = min(int(vmem_bytes * 5 // 4), 100 * 2**20)

    out_slab = pl.pallas_call(
        kernel,
        out_shape=jax.ShapeDtypeStruct((n, cout, length), jnp.bfloat16),
        grid=(n,),
        in_specs=[
            pl.BlockSpec((1, cin, p_tot), lambda i: (i, 0, 0)),       # x (batch)
            pl.BlockSpec((ng, cmid, gt * cin), lambda i: (0, 0, 0)),  # w1 resident
            pl.BlockSpec((cmid, 1), lambda i: (0, 0)),                # shift1
            pl.BlockSpec((ng, cout, gt * cmid), lambda i: (0, 0, 0)), # w2 resident
            pl.BlockSpec((cout, 1), lambda i: (0, 0)),                # shift2
            pl.BlockSpec((1, length), lambda i: (0, 0)),              # mask
        ],
        out_specs=pl.BlockSpec((1, cout, length), lambda i: (i, 0, 0)),
        scratch_shapes=[pltpu.VMEM((cmid, p_tot), jnp.float32),            # h
                        pltpu.VMEM((gt * cin, lane_tile), jnp.float32)],   # xcol
        compiler_params=pltpu.CompilerParams(**cparams),
    )(x_flat, w1_g, shift1, w2_g, shift2, mask)

    # Scatter the lane-aligned slab back to NCDHW (cheap fused pad/reshape/slice).
    out_core = out_slab[:, :, :raw_len]
    out_pad = jnp.pad(out_core,
                      ((0, 0), (0, 0), (raw_c0, p_vol - raw_c0 - raw_len)))
    out = out_pad.reshape(n, cout, tp, hp, wp)[:, :, 1:t + 1, 1:h + 1, 1:w + 1]
    return out.astype(jnp.float32)


# ------------------------------ references --------------------------------- #

def _reference_f32(x, params, eps=1e-5):
    """Full-f32 reference faithful to the PyTorch module."""
    dn = lax.conv_dimension_numbers(x.shape, params["conv1_w"].shape,
                                    ("NCDHW", "OIDHW", "NCDHW"))

    def conv(v, wgt):
        return lax.conv_general_dilated(v, wgt, window_strides=(1, 1, 1),
                                        padding=[(1, 1)] * 3,
                                        dimension_numbers=dn)

    def bn(v, g, b, m, var):
        rs = lambda a: a.reshape(1, -1, 1, 1, 1)
        return (v - rs(m)) / jnp.sqrt(rs(var) + eps) * rs(g) + rs(b)

    out = jax.nn.relu(bn(conv(x, params["conv1_w"]), params["bn1_gamma"],
                         params["bn1_beta"], params["bn1_mean"],
                         params["bn1_var"]))
    out = bn(conv(out, params["conv2_w"]), params["bn2_gamma"],
             params["bn2_beta"], params["bn2_mean"], params["bn2_var"])
    return jax.nn.relu(out + x)


def _reference_mixed(x, params, eps=1e-5):
    """Reference matching the kernel's bf16-operand / f32-accumulate precision."""
    w1_eff, _, shift1 = _prep_weights(params["conv1_w"], params["bn1_gamma"],
                                      params["bn1_beta"], params["bn1_mean"],
                                      params["bn1_var"], 1, eps)
    w2_eff, _, shift2 = _prep_weights(params["conv2_w"], params["bn2_gamma"],
                                      params["bn2_beta"], params["bn2_mean"],
                                      params["bn2_var"], 1, eps)
    dn = lax.conv_dimension_numbers(x.shape, w1_eff.shape,
                                    ("NCDHW", "OIDHW", "NCDHW"))

    def conv(v, wgt):  # bf16-rounded operands, f32 accumulation (like the MXU)
        return lax.conv_general_dilated(
            v.astype(jnp.bfloat16).astype(jnp.float32),
            wgt.astype(jnp.float32),
            window_strides=(1, 1, 1), padding=[(1, 1)] * 3,
            dimension_numbers=dn)

    rs = lambda a: a.reshape(1, -1, 1, 1, 1)
    h1 = jax.nn.relu(conv(x, w1_eff) + rs(shift1[:, 0]))
    out = conv(h1, w2_eff) + rs(shift2[:, 0]) + x            # exact f32 residual
    out = jax.nn.relu(out).astype(jnp.bfloat16)              # kernel output dtype
    return out.astype(jnp.float32)


# ---------------------------------- main ------------------------------------ #

def _init_params(key, inplanes, planes):
    k1, k2, k3, k4 = jax.random.split(key, 4)
    std1 = (2.0 / (inplanes * 27)) ** 0.5
    std2 = (2.0 / (planes * 27)) ** 0.5
    return {
        "conv1_w": std1 * jax.random.normal(k1, (planes, inplanes, 3, 3, 3), jnp.float32),
        "conv2_w": std2 * jax.random.normal(k2, (planes, planes, 3, 3, 3), jnp.float32),
        "bn1_gamma": jnp.ones((planes,), jnp.float32),
        "bn1_beta": jnp.zeros((planes,), jnp.float32),
        "bn1_mean": 0.1 * jax.random.normal(k3, (planes,), jnp.float32),
        "bn1_var": jnp.ones((planes,), jnp.float32),
        "bn2_gamma": jnp.ones((planes,), jnp.float32),
        "bn2_beta": jnp.zeros((planes,), jnp.float32),
        "bn2_mean": 0.1 * jax.random.normal(k4, (planes,), jnp.float32),
        "bn2_var": jnp.ones((planes,), jnp.float32),
    }


if __name__ == "__main__":
    # BasicBlock3d(inplanes=8, planes=8), default strides -> no downsample.
    N, C, T, H, W = 2, 8, 4, 8, 8
    key = jax.random.PRNGKey(0)
    kx, kp = jax.random.split(key)
    x = jax.random.normal(kx, (N, C, T, H, W), jnp.float32)
    params = _init_params(kp, inplanes=C, planes=C)

    out = jax.block_until_ready(basic_block3d_forward(x, params))
    assert out.shape == (N, C, T, H, W)

    # Strict check vs a reference using the kernel's exact mixed precision.
    ref_mixed = jax.block_until_ready(jax.jit(_reference_mixed)(x, params))
    assert jnp.allclose(out, ref_mixed, atol=2e-2, rtol=2e-2), \
        "mismatch vs mixed-precision reference"

    # Loose sanity bound vs the full-f32 PyTorch-faithful reference
    # (kernel deliberately feeds bf16 operands to the MXU).
    ref_f32 = jax.block_until_ready(jax.jit(_reference_f32)(x, params))
    assert jnp.allclose(out, ref_f32, atol=1e-1, rtol=1e-1), \
        "mismatch vs f32 reference"

    print("KERNEL_OK")
</pallas_src>

<mosaic_0001>
module attributes {stable_mosaic.version = 11 : i64} {
  func.func @_basic_block3d_kernel(%arg0: i32, %arg1: memref<1x8x640xf32, #tpu.memory_space<vmem>>, %arg2: memref<1x8x216xbf16, #tpu.memory_space<vmem>>, %arg3: memref<8x1xf32, #tpu.memory_space<vmem>>, %arg4: memref<1x8x216xbf16, #tpu.memory_space<vmem>>, %arg5: memref<8x1xf32, #tpu.memory_space<vmem>>, %arg6: memref<1x384xf32, #tpu.memory_space<vmem>>, %arg7: memref<1x8x384xbf16, #tpu.memory_space<vmem>>, %arg8: memref<8x640xf32, #tpu.memory_space<vmem>>, %arg9: memref<216x384xf32, #tpu.memory_space<vmem>>) attributes {dimension_semantics = [#tpu.dimension_semantics<parallel>], iteration_bounds = array<i64: 2>, scalar_prefetch = 0 : i64, scratch_operands = 2 : i64, tpu.core_type = #tpu.core_type<tc>, window_params = [{transform_indices = @transform_0, window_bounds = array<i64: 1, 8, 640>}, {pipeline_mode = #tpu.pipeline_mode<synchronous>, transform_indices = @transform_1, window_bounds = array<i64: 1, 8, 216>}, {pipeline_mode = #tpu.pipeline_mode<synchronous>, transform_indices = @transform_2, window_bounds = array<i64: 8, 1>}, {pipeline_mode = #tpu.pipeline_mode<synchronous>, transform_indices = @transform_3, window_bounds = array<i64: 1, 8, 216>}, {pipeline_mode = #tpu.pipeline_mode<synchronous>, transform_indices = @transform_4, window_bounds = array<i64: 8, 1>}, {pipeline_mode = #tpu.pipeline_mode<synchronous>, transform_indices = @transform_5, window_bounds = array<i64: 1, 384>}, {transform_indices = @transform_6, window_bounds = array<i64: 1, 8, 384>}]} {
    %cst = arith.constant 0.000000e+00 : f32
    %0 = vector.broadcast %cst : f32 to vector<8x128xf32>
    %c0 = arith.constant 0 : index
    %c0_0 = arith.constant 0 : index
    %1 = vector.load %arg8[%c0, %c0_0] : memref<8x640xf32, #tpu.memory_space<vmem>>, vector<8x128xf32>
    tpu.vector_store %arg8[%c0, %c0_0], %0 {strides = array<i32>} : memref<8x640xf32, #tpu.memory_space<vmem>>, vector<8x128xf32>,
    %cst_1 = arith.constant 0.000000e+00 : f32
    %2 = vector.broadcast %cst_1 : f32 to vector<8x128xf32>
    %c0_2 = arith.constant 0 : index
    %c512 = arith.constant 512 : index
    %3 = vector.load %arg8[%c0_2, %c512] : memref<8x640xf32, #tpu.memory_space<vmem>>, vector<8x128xf32>
    tpu.vector_store %arg8[%c0_2, %c512], %2 {strides = array<i32>} : memref<8x640xf32, #tpu.memory_space<vmem>>, vector<8x128xf32>,
    %c0_3 = arith.constant 0 : index
    %c0_4 = arith.constant 0 : index
    %c17 = arith.constant 17 : index
    %4 = vector.load %arg1[%c0_3, %c0_4, %c17] : memref<1x8x640xf32, #tpu.memory_space<vmem>>, vector<1x8x384xf32>
    %5 = vector.shape_cast %4 : vector<1x8x384xf32> to vector<8x384xf32>
    %c0_5 = arith.constant 0 : index
    %c0_6 = arith.constant 0 : index
    %6 = vector.load %arg9[%c0_5, %c0_6] : memref<216x384xf32, #tpu.memory_space<vmem>>, vector<8x384xf32>
    tpu.vector_store %arg9[%c0_5, %c0_6], %5 {strides = array<i32>} : memref<216x384xf32, #tpu.memory_space<vmem>>, vector<8x384xf32>,
    %c0_7 = arith.constant 0 : index
    %c0_8 = arith.constant 0 : index
    %c18 = arith.constant 18 : index
    %7 = vector.load %arg1[%c0_7, %c0_8, %c18] : memref<1x8x640xf32, #tpu.memory_space<vmem>>, vector<1x8x384xf32>
    %8 = vector.shape_cast %7 : vector<1x8x384xf32> to vector<8x384xf32>
    %c8 = arith.constant 8 : index
    %c0_9 = arith.constant 0 : index
    %9 = vector.load %arg9[%c8, %c0_9] : memref<216x384xf32, #tpu.memory_space<vmem>>, vector<8x384xf32>
    tpu.vector_store %arg9[%c8, %c0_9], %8 {strides = array<i32>} : memref<216x384xf32, #tpu.memory_space<vmem>>, vector<8x384xf32>,
    %c0_10 = arith.constant 0 : index
    %c0_11 = arith.constant 0 : index
    %c19 = arith.constant 19 : index
    %10 = vector.load %arg1[%c0_10, %c0_11, %c19] : memref<1x8x640xf32, #tpu.memory_space<vmem>>, vector<1x8x384xf32>
    %11 = vector.shape_cast %10 : vector<1x8x384xf32> to vector<8x384xf32>
    %c16 = arith.constant 16 : index
    %c0_12 = arith.constant 0 : index
    %12 = vector.load %arg9[%c16, %c0_12] : memref<216x384xf32, #tpu.memory_space<vmem>>, vector<8x384xf32>
    tpu.vector_store %arg9[%c16, %c0_12], %11 {strides = array<i32>} : memref<216x384xf32, #tpu.memory_space<vmem>>, vector<8x384xf32>,
    %c0_13 = arith.constant 0 : index
    %c0_14 = arith.constant 0 : index
    %c27 = arith.constant 27 : index
    %13 = vector.load %arg1[%c0_13, %c0_14, %c27] : memref<1x8x640xf32, #tpu.memory_space<vmem>>, vector<1x8x384xf32>
    %14 = vector.shape_cast %13 : vector<1x8x384xf32> to vector<8x384xf32>
    %c24 = arith.constant 24 : index
    %c0_15 = arith.constant 0 : index
    %15 = vector.load %arg9[%c24, %c0_15] : memref<216x384xf32, #tpu.memory_space<vmem>>, vector<8x384xf32>
    tpu.vector_store %arg9[%c24, %c0_15], %14 {strides = array<i32>} : memref<216x384xf32, #tpu.memory_space<vmem>>, vector<8x384xf32>,
    %c0_16 = arith.constant 0 : index
    %c0_17 = arith.constant 0 : index
    %c28 = arith.constant 28 : index
    %16 = vector.load %arg1[%c0_16, %c0_17, %c28] : memref<1x8x640xf32, #tpu.memory_space<vmem>>, vector<1x8x384xf32>
    %17 = vector.shape_cast %16 : vector<1x8x384xf32> to vector<8x384xf32>
    %c32 = arith.constant 32 : index
    %c0_18 = arith.constant 0 : index
    %18 = vector.load %arg9[%c32, %c0_18] : memref<216x384xf32, #tpu.memory_space<vmem>>, vector<8x384xf32>
    tpu.vector_store %arg9[%c32, %c0_18], %17 {strides = array<i32>} : memref<216x384xf32, #tpu.memory_space<vmem>>, vector<8x384xf32>,
    %c0_19 = arith.constant 0 : index
    %c0_20 = arith.constant 0 : index
    %c29 = arith.constant 29 : index
    %19 = vector.load %arg1[%c0_19, %c0_20, %c29] : memref<1x8x640xf32, #tpu.memory_space<vmem>>, vector<1x8x384xf32>
    %20 = vector.shape_cast %19 : vector<1x8x384xf32> to vector<8x384xf32>
    %c40 = arith.constant 40 : index
    %c0_21 = arith.constant 0 : index
    %21 = vector.load %arg9[%c40, %c0_21] : memref<216x384xf32, #tpu.memory_space<vmem>>, vector<8x384xf32>
    tpu.vector_store %arg9[%c40, %c0_21], %20 {strides = array<i32>} : memref<216x384xf32, #tpu.memory_space<vmem>>, vector<8x384xf32>,
    %c0_22 = arith.constant 0 : index
    %c0_23 = arith.constant 0 : index
    %c37 = arith.constant 37 : index
    %22 = vector.load %arg1[%c0_22, %c0_23, %c37] : memref<1x8x640xf32, #tpu.memory_space<vmem>>, vector<1x8x384xf32>
    %23 = vector.shape_cast %22 : vector<1x8x384xf32> to vector<8x384xf32>
    %c48 = arith.constant 48 : index
    %c0_24 = arith.constant 0 : index
    %24 = vector.load %arg9[%c48, %c0_24] : memref<216x384xf32, #tpu.memory_space<vmem>>, vector<8x384xf32>
    tpu.vector_store %arg9[%c48, %c0_24], %23 {strides = array<i32>} : memref<216x384xf32, #tpu.memory_space<vmem>>, vector<8x384xf32>,
    %c0_25 = arith.constant 0 : index
    %c0_26 = arith.constant 0 : index
    %c38 = arith.constant 38 : index
    %25 = vector.load %arg1[%c0_25, %c0_26, %c38] : memref<1x8x640xf32, #tpu.memory_space<vmem>>, vector<1x8x384xf32>
    %26 = vector.shape_cast %25 : vector<1x8x384xf32> to vector<8x384xf32>
    %c56 = arith.constant 56 : index
    %c0_27 = arith.constant 0 : index
    %27 = vector.load %arg9[%c56, %c0_27] : memref<216x384xf32, #tpu.memory_space<vmem>>, vector<8x384xf32>
    tpu.vector_store %arg9[%c56, %c0_27], %26 {strides = array<i32>} : memref<216x384xf32, #tpu.memory_space<vmem>>, vector<8x384xf32>,
    %c0_28 = arith.constant 0 : index
    %c0_29 = arith.constant 0 : index
    %c39 = arith.constant 39 : index
    %28 = vector.load %arg1[%c0_28, %c0_29, %c39] : memref<1x8x640xf32, #tpu.memory_space<vmem>>, vector<1x8x384xf32>
    %29 = vector.shape_cast %28 : vector<1x8x384xf32> to vector<8x384xf32>
    %c64 = arith.constant 64 : index
    %c0_30 = arith.constant 0 : index
    %30 = vector.load %arg9[%c64, %c0_30] : memref<216x384xf32, #tpu.memory_space<vmem>>, vector<8x384xf32>
    tpu.vector_store %arg9[%c64, %c0_30], %29 {strides = array<i32>} : memref<216x384xf32, #tpu.memory_space<vmem>>, vector<8x384xf32>,
    %c0_31 = arith.constant 0 : index
    %c0_32 = arith.constant 0 : index
    %c117 = arith.constant 117 : index
    %31 = vector.load %arg1[%c0_31, %c0_32, %c117] : memref<1x8x640xf32, #tpu.memory_space<vmem>>, vector<1x8x384xf32>
    %32 = vector.shape_cast %31 : vector<1x8x384xf32> to vector<8x384xf32>
    %c72 = arith.constant 72 : index
    %c0_33 = arith.constant 0 : index
    %33 = vector.load %arg9[%c72, %c0_33] : memref<216x384xf32, #tpu.memory_space<vmem>>, vector<8x384xf32>
    tpu.vector_store %arg9[%c72, %c0_33], %32 {strides = array<i32>} : memref<216x384xf32, #tpu.memory_space<vmem>>, vector<8x384xf32>,
    %c0_34 = arith.constant 0 : index
    %c0_35 = arith.constant 0 : index
    %c118 = arith.constant 118 : index
    %34 = vector.load %arg1[%c0_34, %c0_35, %c118] : memref<1x8x640xf32, #tpu.memory_space<vmem>>, vector<1x8x384xf32>
    %35 = vector.shape_cast %34 : vector<1x8x384xf32> to vector<8x384xf32>
    %c80 = arith.constant 80 : index
    %c0_36 = arith.constant 0 : index
    %36 = vector.load %arg9[%c80, %c0_36] : memref<216x384xf32, #tpu.memory_space<vmem>>, vector<8x384xf32>
    tpu.vector_store %arg9[%c80, %c0_36], %35 {strides = array<i32>} : memref<216x384xf32, #tpu.memory_space<vmem>>, vector<8x384xf32>,
    %c0_37 = arith.constant 0 : index
    %c0_38 = arith.constant 0 : index
    %c119 = arith.constant 119 : index
    %37 = vector.load %arg1[%c0_37, %c0_38, %c119] : memref<1x8x640xf32, #tpu.memory_space<vmem>>, vector<1x8x384xf32>
    %38 = vector.shape_cast %37 : vector<1x8x384xf32> to vector<8x384xf32>
    %c88 = arith.constant 88 : index
    %c0_39 = arith.constant 0 : index
    %39 = vector.load %arg9[%c88, %c0_39] : memref<216x384xf32, #tpu.memory_space<vmem>>, vector<8x384xf32>
    tpu.vector_store %arg9[%c88, %c0_39], %38 {strides = array<i32>} : memref<216x384xf32, #tpu.memory_space<vmem>>, vector<8x384xf32>,
    %c0_40 = arith.constant 0 : index
    %c0_41 = arith.constant 0 : index
    %c127 = arith.constant 127 : index
    %40 = vector.load %arg1[%c0_40, %c0_41, %c127] : memref<1x8x640xf32, #tpu.memory_space<vmem>>, vector<1x8x384xf32>
    %41 = vector.shape_cast %40 : vector<1x8x384xf32> to vector<8x384xf32>
    %c96 = arith.constant 96 : index
    %c0_42 = arith.constant 0 : index
    %42 = vector.load %arg9[%c96, %c0_42] : memref<216x384xf32, #tpu.memory_space<vmem>>, vector<8x384xf32>
    tpu.vector_store %arg9[%c96, %c0_42], %41 {strides = array<i32>} : memref<216x384xf32, #tpu.memory_space<vmem>>, vector<8x384xf32>,
    %c0_43 = arith.constant 0 : index
    %c0_44 = arith.constant 0 : index
    %c128 = arith.constant 128 : index
    %43 = vector.load %arg1[%c0_43, %c0_44, %c128] : memref<1x8x640xf32, #tpu.memory_space<vmem>>, vector<1x8x384xf32>
    %44 = vector.shape_cast %43 : vector<1x8x384xf32> to vector<8x384xf32>
    %c104 = arith.constant 104 : index
    %c0_45 = arith.constant 0 : index
    %45 = vector.load %arg9[%c104, %c0_45] : memref<216x384xf32, #tpu.memory_space<vmem>>, vector<8x384xf32>
    tpu.vector_store %arg9[%c104, %c0_45], %44 {strides = array<i32>} : memref<216x384xf32, #tpu.memory_space<vmem>>, vector<8x384xf32>,
    %c0_46 = arith.constant 0 : index
    %c0_47 = arith.constant 0 : index
    %c129 = arith.constant 129 : index
    %46 = vector.load %arg1[%c0_46, %c0_47, %c129] : memref<1x8x640xf32, #tpu.memory_space<vmem>>, vector<1x8x384xf32>
    %47 = vector.shape_cast %46 : vector<1x8x384xf32> to vector<8x384xf32>
    %c112 = arith.constant 112 : index
    %c0_48 = arith.constant 0 : index
    %48 = vector.load %arg9[%c112, %c0_48] : memref<216x384xf32, #tpu.memory_space<vmem>>, vector<8x384xf32>
    tpu.vector_store %arg9[%c112, %c0_48], %47 {strides = array<i32>} : memref<216x384xf32, #tpu.memory_space<vmem>>, vector<8x384xf32>,
    %c0_49 = arith.constant 0 : index
    %c0_50 = arith.constant 0 : index
    %c137 = arith.constant 137 : index
    %49 = vector.load %arg1[%c0_49, %c0_50, %c137] : memref<1x8x640xf32, #tpu.memory_space<vmem>>, vector<1x8x384xf32>
    %50 = vector.shape_cast %49 : vector<1x8x384xf32> to vector<8x384xf32>
    %c120 = arith.constant 120 : index
    %c0_51 = arith.constant 0 : index
    %51 = vector.load %arg9[%c120, %c0_51] : memref<216x384xf32, #tpu.memory_space<vmem>>, vector<8x384xf32>
    tpu.vector_store %arg9[%c120, %c0_51], %50 {strides = array<i32>} : memref<216x384xf32, #tpu.memory_space<vmem>>, vector<8x384xf32>,
    %c0_52 = arith.constant 0 : index
    %c0_53 = arith.constant 0 : index
    %c138 = arith.constant 138 : index
    %52 = vector.load %arg1[%c0_52, %c0_53, %c138] : memref<1x8x640xf32, #tpu.memory_space<vmem>>, vector<1x8x384xf32>
    %53 = vector.shape_cast %52 : vector<1x8x384xf32> to vector<8x384xf32>
    %c128_54 = arith.constant 128 : index
    %c0_55 = arith.constant 0 : index
    %54 = vector.load %arg9[%c128_54, %c0_55] : memref<216x384xf32, #tpu.memory_space<vmem>>, vector<8x384xf32>
    tpu.vector_store %arg9[%c128_54, %c0_55], %53 {strides = array<i32>} : memref<216x384xf32, #tpu.memory_space<vmem>>, vector<8x384xf32>,
    %c0_56 = arith.constant 0 : index
    %c0_57 = arith.constant 0 : index
    %c139 = arith.constant 139 : index
    %55 = vector.load %arg1[%c0_56, %c0_57, %c139] : memref<1x8x640xf32, #tpu.memory_space<vmem>>, vector<1x8x384xf32>
    %56 = vector.shape_cast %55 : vector<1x8x384xf32> to vector<8x384xf32>
    %c136 = arith.constant 136 : index
    %c0_58 = arith.constant 0 : index
    %57 = vector.load %arg9[%c136, %c0_58] : memref<216x384xf32, #tpu.memory_space<vmem>>, vector<8x384xf32>
    tpu.vector_store %arg9[%c136, %c0_58], %56 {strides = array<i32>} : memref<216x384xf32, #tpu.memory_space<vmem>>, vector<8x384xf32>,
    %c0_59 = arith.constant 0 : index
    %c0_60 = arith.constant 0 : index
    %c217 = arith.constant 217 : index
    %58 = vector.load %arg1[%c0_59, %c0_60, %c217] : memref<1x8x640xf32, #tpu.memory_space<vmem>>, vector<1x8x384xf32>
    %59 = vector.shape_cast %58 : vector<1x8x384xf32> to vector<8x384xf32>
    %c144 = arith.constant 144 : index
    %c0_61 = arith.constant 0 : index
    %60 = vector.load %arg9[%c144, %c0_61] : memref<216x384xf32, #tpu.memory_space<vmem>>, vector<8x384xf32>
    tpu.vector_store %arg9[%c144, %c0_61], %59 {strides = array<i32>} : memref<216x384xf32, #tpu.memory_space<vmem>>, vector<8x384xf32>,
    %c0_62 = arith.constant 0 : index
    %c0_63 = arith.constant 0 : index
    %c218 = arith.constant 218 : index
    %61 = vector.load %arg1[%c0_62, %c0_63, %c218] : memref<1x8x640xf32, #tpu.memory_space<vmem>>, vector<1x8x384xf32>
    %62 = vector.shape_cast %61 : vector<1x8x384xf32> to vector<8x384xf32>
    %c152 = arith.constant 152 : index
    %c0_64 = arith.constant 0 : index
    %63 = vector.load %arg9[%c152, %c0_64] : memref<216x384xf32, #tpu.memory_space<vmem>>, vector<8x384xf32>
    tpu.vector_store %arg9[%c152, %c0_64], %62 {strides = array<i32>} : memref<216x384xf32, #tpu.memory_space<vmem>>, vector<8x384xf32>,
    %c0_65 = arith.constant 0 : index
    %c0_66 = arith.constant 0 : index
    %c219 = arith.constant 219 : index
    %64 = vector.load %arg1[%c0_65, %c0_66, %c219] : memref<1x8x640xf32, #tpu.memory_space<vmem>>, vector<1x8x384xf32>
    %65 = vector.shape_cast %64 : vector<1x8x384xf32> to vector<8x384xf32>
    %c160 = arith.constant 160 : index
    %c0_67 = arith.constant 0 : index
    %66 = vector.load %arg9[%c160, %c0_67] : memref<216x384xf32, #tpu.memory_space<vmem>>, vector<8x384xf32>
    tpu.vector_store %arg9[%c160, %c0_67], %65 {strides = array<i32>} : memref<216x384xf32, #tpu.memory_space<vmem>>, vector<8x384xf32>,
    %c0_68 = arith.constant 0 : index
    %c0_69 = arith.constant 0 : index
    %c227 = arith.constant 227 : index
    %67 = vector.load %arg1[%c0_68, %c0_69, %c227] : memref<1x8x640xf32, #tpu.memory_space<vmem>>, vector<1x8x384xf32>
    %68 = vector.shape_cast %67 : vector<1x8x384xf32> to vector<8x384xf32>
    %c168 = arith.constant 168 : index
    %c0_70 = arith.constant 0 : index
    %69 = vector.load %arg9[%c168, %c0_70] : memref<216x384xf32, #tpu.memory_space<vmem>>, vector<8x384xf32>
    tpu.vector_store %arg9[%c168, %c0_70], %68 {strides = array<i32>} : memref<216x384xf32, #tpu.memory_space<vmem>>, vector<8x384xf32>,
    %c0_71 = arith.constant 0 : index
    %c0_72 = arith.constant 0 : index
    %c228 = arith.constant 228 : index
    %70 = vector.load %arg1[%c0_71, %c0_72, %c228] : memref<1x8x640xf32, #tpu.memory_space<vmem>>, vector<1x8x384xf32>
    %71 = vector.shape_cast %70 : vector<1x8x384xf32> to vector<8x384xf32>
    %c176 = arith.constant 176 : index
    %c0_73 = arith.constant 0 : index
    %72 = vector.load %arg9[%c176, %c0_73] : memref<216x384xf32, #tpu.memory_space<vmem>>, vector<8x384xf32>
    tpu.vector_store %arg9[%c176, %c0_73], %71 {strides = array<i32>} : memref<216x384xf32, #tpu.memory_space<vmem>>, vector<8x384xf32>,
    %c0_74 = arith.constant 0 : index
    %c0_75 = arith.constant 0 : index
    %c229 = arith.constant 229 : index
    %73 = vector.load %arg1[%c0_74, %c0_75, %c229] : memref<1x8x640xf32, #tpu.memory_space<vmem>>, vector<1x8x384xf32>
    %74 = vector.shape_cast %73 : vector<1x8x384xf32> to vector<8x384xf32>
    %c184 = arith.constant 184 : index
    %c0_76 = arith.constant 0 : index
    %75 = vector.load %arg9[%c184, %c0_76] : memref<216x384xf32, #tpu.memory_space<vmem>>, vector<8x384xf32>
    tpu.vector_store %arg9[%c184, %c0_76], %74 {strides = array<i32>} : memref<216x384xf32, #tpu.memory_space<vmem>>, vector<8x384xf32>,
    %c0_77 = arith.constant 0 : index
    %c0_78 = arith.constant 0 : index
    %c237 = arith.constant 237 : index
    %76 = vector.load %arg1[%c0_77, %c0_78, %c237] : memref<1x8x640xf32, #tpu.memory_space<vmem>>, vector<1x8x384xf32>
    %77 = vector.shape_cast %76 : vector<1x8x384xf32> to vector<8x384xf32>
    %c192 = arith.constant 192 : index
    %c0_79 = arith.constant 0 : index
    %78 = vector.load %arg9[%c192, %c0_79] : memref<216x384xf32, #tpu.memory_space<vmem>>, vector<8x384xf32>
    tpu.vector_store %arg9[%c192, %c0_79], %77 {strides = array<i32>} : memref<216x384xf32, #tpu.memory_space<vmem>>, vector<8x384xf32>,
    %c0_80 = arith.constant 0 : index
    %c0_81 = arith.constant 0 : index
    %c238 = arith.constant 238 : index
    %79 = vector.load %arg1[%c0_80, %c0_81, %c238] : memref<1x8x640xf32, #tpu.memory_space<vmem>>, vector<1x8x384xf32>
    %80 = vector.shape_cast %79 : vector<1x8x384xf32> to vector<8x384xf32>
    %c200 = arith.constant 200 : index
    %c0_82 = arith.constant 0 : index
    %81 = vector.load %arg9[%c200, %c0_82] : memref<216x384xf32, #tpu.memory_space<vmem>>, vector<8x384xf32>
    tpu.vector_store %arg9[%c200, %c0_82], %80 {strides = array<i32>} : memref<216x384xf32, #tpu.memory_space<vmem>>, vector<8x384xf32>,
    %c0_83 = arith.constant 0 : index
    %c0_84 = arith.constant 0 : index
    %c239 = arith.constant 239 : index
    %82 = vector.load %arg1[%c0_83, %c0_84, %c239] : memref<1x8x640xf32, #tpu.memory_space<vmem>>, vector<1x8x384xf32>
    %83 = vector.shape_cast %82 : vector<1x8x384xf32> to vector<8x384xf32>
    %c208 = arith.constant 208 : index
    %c0_85 = arith.constant 0 : index
    %84 = vector.load %arg9[%c208, %c0_85] : memref<216x384xf32, #tpu.memory_space<vmem>>, vector<8x384xf32>
    tpu.vector_store %arg9[%c208, %c0_85], %83 {strides = array<i32>} : memref<216x384xf32, #tpu.memory_space<vmem>>, vector<8x384xf32>,
    %c0_86 = arith.constant 0 : index
    %c0_87 = arith.constant 0 : index
    %c0_88 = arith.constant 0 : index
    %85 = vector.load %arg2[%c0_86, %c0_87, %c0_88] : memref<1x8x216xbf16, #tpu.memory_space<vmem>>, vector<1x8x216xbf16>
    %86 = vector.shape_cast %85 : vector<1x8x216xbf16> to vector<8x216xbf16>
    %c0_89 = arith.constant 0 : index
    %c0_90 = arith.constant 0 : index
    %87 = vector.load %arg9[%c0_89, %c0_90] : memref<216x384xf32, #tpu.memory_space<vmem>>, vector<216x384xf32>
    %88 = arith.truncf %87 : vector<216x384xf32> to vector<216x384xbf16>
    %cst_91 = arith.constant dense<0.000000e+00> : vector<8x384xf32>
    %89 = tpu.matmul %86, %88, %cst_91 {dimension_numbers = #tpu.dot_dimension_numbers<[1], [0], [0], [1], [0, 0, 1, 1], [], []>} : vector<8x216xbf16>, vector<216x384xbf16>, vector<8x384xf32> -> vector<8x384xf32>
    %c0_92 = arith.constant 0 : index
    %c0_93 = arith.constant 0 : index
    %90 = vector.load %arg3[%c0_92, %c0_93] : memref<8x1xf32, #tpu.memory_space<vmem>>, vector<8x1xf32>
    %91 = vector.broadcast %90 : vector<8x1xf32> to vector<8x384xf32>
    %92 = arith.addf %89, %91 : vector<8x384xf32>
    %cst_94 = arith.constant 0.000000e+00 : f32
    %93 = vector.broadcast %cst_94 : f32 to vector<8x384xf32>
    %94 = arith.maximumf %92, %93 : vector<8x384xf32>
    %c0_95 = arith.constant 0 : index
    %c0_96 = arith.constant 0 : index
    %95 = vector.load %arg6[%c0_95, %c0_96] : memref<1x384xf32, #tpu.memory_space<vmem>>, vector<1x384xf32>
    %96 = vector.broadcast %95 : vector<1x384xf32> to vector<8x384xf32>
    %97 = arith.mulf %94, %96 : vector<8x384xf32>
    %c0_97 = arith.constant 0 : index
    %c128_98 = arith.constant 128 : index
    %98 = vector.load %arg8[%c0_97, %c128_98] : memref<8x640xf32, #tpu.memory_space<vmem>>, vector<8x384xf32>
    tpu.vector_store %arg8[%c0_97, %c128_98], %97 {strides = array<i32>} : memref<8x640xf32, #tpu.memory_space<vmem>>, vector<8x384xf32>,
    %c0_99 = arith.constant 0 : index
    %c17_100 = arith.constant 17 : index
    %99 = vector.load %arg8[%c0_99, %c17_100] : memref<8x640xf32, #tpu.memory_space<vmem>>, vector<8x384xf32>
    %c0_101 = arith.constant 0 : index
    %c0_102 = arith.constant 0 : index
    %100 = vector.load %arg9[%c0_101, %c0_102] : memref<216x384xf32, #tpu.memory_space<vmem>>, vector<8x384xf32>
    tpu.vector_store %arg9[%c0_101, %c0_102], %99 {strides = array<i32>} : memref<216x384xf32, #tpu.memory_space<vmem>>, vector<8x384xf32>,
    %c0_103 = arith.constant 0 : index
    %c18_104 = arith.constant 18 : index
    %101 = vector.load %arg8[%c0_103, %c18_104] : memref<8x640xf32, #tpu.memory_space<vmem>>, vector<8x384xf32>
    %c8_105 = arith.constant 8 : index
    %c0_106 = arith.constant 0 : index
    %102 = vector.load %arg9[%c8_105, %c0_106] : memref<216x384xf32, #tpu.memory_space<vmem>>, vector<8x384xf32>
    tpu.vector_store %arg9[%c8_105, %c0_106], %101 {strides = array<i32>} : memref<216x384xf32, #tpu.memory_space<vmem>>, vector<8x384xf32>,
    %c0_107 = arith.constant 0 : index
    %c19_108 = arith.constant 19 : index
    %103 = vector.load %arg8[%c0_107, %c19_108] : memref<8x640xf32, #tpu.memory_space<vmem>>, vector<8x384xf32>
    %c16_109 = arith.constant 16 : index
    %c0_110 = arith.constant 0 : index
    %104 = vector.load %arg9[%c16_109, %c0_110] : memref<216x384xf32, #tpu.memory_space<vmem>>, vector<8x384xf32>
    tpu.vector_store %arg9[%c16_109, %c0_110], %103 {strides = array<i32>} : memref<216x384xf32, #tpu.memory_space<vmem>>, vector<8x384xf32>,
    %c0_111 = arith.constant 0 : index
    %c27_112 = arith.constant 27 : index
    %105 = vector.load %arg8[%c0_111, %c27_112] : memref<8x640xf32, #tpu.memory_space<vmem>>, vector<8x384xf32>
    %c24_113 = arith.constant 24 : index
    %c0_114 = arith.constant 0 : index
    %106 = vector.load %arg9[%c24_113, %c0_114] : memref<216x384xf32, #tpu.memory_space<vmem>>, vector<8x384xf32>
    tpu.vector_store %arg9[%c24_113, %c0_114], %105 {strides = array<i32>} : memref<216x384xf32, #tpu.memory_space<vmem>>, vector<8x384xf32>,
    %c0_115 = arith.constant 0 : index
    %c28_116 = arith.constant 28 : index
    %107 = vector.load %arg8[%c0_115, %c28_116] : memref<8x640xf32, #tpu.memory_space<vmem>>, vector<8x384xf32>
    %c32_117 = arith.constant 32 : index
    %c0_118 = arith.constant 0 : index
    %108 = vector.load %arg9[%c32_117, %c0_118] : memref<216x384xf32, #tpu.memory_space<vmem>>, vector<8x384xf32>
    tpu.vector_store %arg9[%c32_117, %c0_118], %107 {strides = array<i32>} : memref<216x384xf32, #tpu.memory_space<vmem>>, vector<8x384xf32>,
    %c0_119 = arith.constant 0 : index
    %c29_120 = arith.constant 29 : index
    %109 = vector.load %arg8[%c0_119, %c29_120] : memref<8x640xf32, #tpu.memory_space<vmem>>, vector<8x384xf32>
    %c40_121 = arith.constant 40 : index
    %c0_122 = arith.constant 0 : index
    %110 = vector.load %arg9[%c40_121, %c0_122] : memref<216x384xf32, #tpu.memory_space<vmem>>, vector<8x384xf32>
    tpu.vector_store %arg9[%c40_121, %c0_122], %109 {strides = array<i32>} : memref<216x384xf32, #tpu.memory_space<vmem>>, vector<8x384xf32>,
    %c0_123 = arith.constant 0 : index
    %c37_124 = arith.constant 37 : index
    %111 = vector.load %arg8[%c0_123, %c37_124] : memref<8x640xf32, #tpu.memory_space<vmem>>, vector<8x384xf32>
    %c48_125 = arith.constant 48 : index
    %c0_126 = arith.constant 0 : index
    %112 = vector.load %arg9[%c48_125, %c0_126] : memref<216x384xf32, #tpu.memory_space<vmem>>, vector<8x384xf32>
    tpu.vector_store %arg9[%c48_125, %c0_126], %111 {strides = array<i32>} : memref<216x384xf32, #tpu.memory_space<vmem>>, vector<8x384xf32>,
    %c0_127 = arith.constant 0 : index
    %c38_128 = arith.constant 38 : index
    %113 = vector.load %arg8[%c0_127, %c38_128] : memref<8x640xf32, #tpu.memory_space<vmem>>, vector<8x384xf32>
    %c56_129 = arith.constant 56 : index
    %c0_130 = arith.constant 0 : index
    %114 = vector.load %arg9[%c56_129, %c0_130] : memref<216x384xf32, #tpu.memory_space<vmem>>, vector<8x384xf32>
    tpu.vector_store %arg9[%c56_129, %c0_130], %113 {strides = array<i32>} : memref<216x384xf32, #tpu.memory_space<vmem>>, vector<8x384xf32>,
    %c0_131 = arith.constant 0 : index
    %c39_132 = arith.constant 39 : index
    %115 = vector.load %arg8[%c0_131, %c39_132] : memref<8x640xf32, #tpu.memory_space<vmem>>, vector<8x384xf32>
    %c64_133 = arith.constant 64 : index
    %c0_134 = arith.constant 0 : index
    %116 = vector.load %arg9[%c64_133, %c0_134] : memref<216x384xf32, #tpu.memory_space<vmem>>, vector<8x384xf32>
    tpu.vector_store %arg9[%c64_133, %c0_134], %115 {strides = array<i32>} : memref<216x384xf32, #tpu.memory_space<vmem>>, vector<8x384xf32>,
    %c0_135 = arith.constant 0 : index
    %c117_136 = arith.constant 117 : index
    %117 = vector.load %arg8[%c0_135, %c117_136] : memref<8x640xf32, #tpu.memory_space<vmem>>, vector<8x384xf32>
    %c72_137 = arith.constant 72 : index
    %c0_138 = arith.constant 0 : index
    %118 = vector.load %arg9[%c72_137, %c0_138] : memref<216x384xf32, #tpu.memory_space<vmem>>, vector<8x384xf32>
    tpu.vector_store %arg9[%c72_137, %c0_138], %117 {strides = array<i32>} : memref<216x384xf32, #tpu.memory_space<vmem>>, vector<8x384xf32>,
    %c0_139 = arith.constant 0 : index
    %c118_140 = arith.constant 118 : index
    %119 = vector.load %arg8[%c0_139, %c118_140] : memref<8x640xf32, #tpu.memory_space<vmem>>, vector<8x384xf32>
    %c80_141 = arith.constant 80 : index
    %c0_142 = arith.constant 0 : index
    %120 = vector.load %arg9[%c80_141, %c0_142] : memref<216x384xf32, #tpu.memory_space<vmem>>, vector<8x384xf32>
    tpu.vector_store %arg9[%c80_141, %c0_142], %119 {strides = array<i32>} : memref<216x384xf32, #tpu.memory_space<vmem>>, vector<8x384xf32>,
    %c0_143 = arith.constant 0 : index
    %c119_144 = arith.constant 119 : index
    %121 = vector.load %arg8[%c0_143, %c119_144] : memref<8x640xf32, #tpu.memory_space<vmem>>, vector<8x384xf32>
    %c88_145 = arith.constant 88 : index
    %c0_146 = arith.constant 0 : index
    %122 = vector.load %arg9[%c88_145, %c0_146] : memref<216x384xf32, #tpu.memory_space<vmem>>, vector<8x384xf32>
    tpu.vector_store %arg9[%c88_145, %c0_146], %121 {strides = array<i32>} : memref<216x384xf32, #tpu.memory_space<vmem>>, vector<8x384xf32>,
    %c0_147 = arith.constant 0 : index
    %c127_148 = arith.constant 127 : index
    %123 = vector.load %arg8[%c0_147, %c127_148] : memref<8x640xf32, #tpu.memory_space<vmem>>, vector<8x384xf32>
    %c96_149 = arith.constant 96 : index
    %c0_150 = arith.constant 0 : index
    %124 = vector.load %arg9[%c96_149, %c0_150] : memref<216x384xf32, #tpu.memory_space<vmem>>, vector<8x384xf32>
    tpu.vector_store %arg9[%c96_149, %c0_150], %123 {strides = array<i32>} : memref<216x384xf32, #tpu.memory_space<vmem>>, vector<8x384xf32>,
    %c0_151 = arith.constant 0 : index
    %c128_152 = arith.constant 128 : index
    %125 = vector.load %arg8[%c0_151, %c128_152] : memref<8x640xf32, #tpu.memory_space<vmem>>, vector<8x384xf32>
    %c104_153 = arith.constant 104 : index
    %c0_154 = arith.constant 0 : index
    %126 = vector.load %arg9[%c104_153, %c0_154] : memref<216x384xf32, #tpu.memory_space<vmem>>, vector<8x384xf32>
    tpu.vector_store %arg9[%c104_153, %c0_154], %125 {strides = array<i32>} : memref<216x384xf32, #tpu.memory_space<vmem>>, vector<8x384xf32>,
    %c0_155 = arith.constant 0 : index
    %c129_156 = arith.constant 129 : index
    %127 = vector.load %arg8[%c0_155, %c129_156] : memref<8x640xf32, #tpu.memory_space<vmem>>, vector<8x384xf32>
    %c112_157 = arith.constant 112 : index
    %c0_158 = arith.constant 0 : index
    %128 = vector.load %arg9[%c112_157, %c0_158] : memref<216x384xf32, #tpu.memory_space<vmem>>, vector<8x384xf32>
    tpu.vector_store %arg9[%c112_157, %c0_158], %127 {strides = array<i32>} : memref<216x384xf32, #tpu.memory_space<vmem>>, vector<8x384xf32>,
    %c0_159 = arith.constant 0 : index
    %c137_160 = arith.constant 137 : index
    %129 = vector.load %arg8[%c0_159, %c137_160] : memref<8x640xf32, #tpu.memory_space<vmem>>, vector<8x384xf32>
    %c120_161 = arith.constant 120 : index
    %c0_162 = arith.constant 0 : index
    %130 = vector.load %arg9[%c120_161, %c0_162] : memref<216x384xf32, #tpu.memory_space<vmem>>, vector<8x384xf32>
    tpu.vector_store %arg9[%c120_161, %c0_162], %129 {strides = array<i32>} : memref<216x384xf32, #tpu.memory_space<vmem>>, vector<8x384xf32>,
    %c0_163 = arith.constant 0 : index
    %c138_164 = arith.constant 138 : index
    %131 = vector.load %arg8[%c0_163, %c138_164] : memref<8x640xf32, #tpu.memory_space<vmem>>, vector<8x384xf32>
    %c128_165 = arith.constant 128 : index
    %c0_166 = arith.constant 0 : index
    %132 = vector.load %arg9[%c128_165, %c0_166] : memref<216x384xf32, #tpu.memory_space<vmem>>, vector<8x384xf32>
    tpu.vector_store %arg9[%c128_165, %c0_166], %131 {strides = array<i32>} : memref<216x384xf32, #tpu.memory_space<vmem>>, vector<8x384xf32>,
    %c0_167 = arith.constant 0 : index
    %c139_168 = arith.constant 139 : index
    %133 = vector.load %arg8[%c0_167, %c139_168] : memref<8x640xf32, #tpu.memory_space<vmem>>, vector<8x384xf32>
    %c136_169 = arith.constant 136 : index
    %c0_170 = arith.constant 0 : index
    %134 = vector.load %arg9[%c136_169, %c0_170] : memref<216x384xf32, #tpu.memory_space<vmem>>, vector<8x384xf32>
    tpu.vector_store %arg9[%c136_169, %c0_170], %133 {strides = array<i32>} : memref<216x384xf32, #tpu.memory_space<vmem>>, vector<8x384xf32>,
    %c0_171 = arith.constant 0 : index
    %c217_172 = arith.constant 217 : index
    %135 = vector.load %arg8[%c0_171, %c217_172] : memref<8x640xf32, #tpu.memory_space<vmem>>, vector<8x384xf32>
    %c144_173 = arith.constant 144 : index
    %c0_174 = arith.constant 0 : index
    %136 = vector.load %arg9[%c144_173, %c0_174] : memref<216x384xf32, #tpu.memory_space<vmem>>, vector<8x384xf32>
    tpu.vector_store %arg9[%c144_173, %c0_174], %135 {strides = array<i32>} : memref<216x384xf32, #tpu.memory_space<vmem>>, vector<8x384xf32>,
    %c0_175 = arith.constant 0 : index
    %c218_176 = arith.constant 218 : index
    %137 = vector.load %arg8[%c0_175, %c218_176] : memref<8x640xf32, #tpu.memory_space<vmem>>, vector<8x384xf32>
    %c152_177 = arith.constant 152 : index
    %c0_178 = arith.constant 0 : index
    %138 = vector.load %arg9[%c152_177, %c0_178] : memref<216x384xf32, #tpu.memory_space<vmem>>, vector<8x384xf32>
    tpu.vector_store %arg9[%c152_177, %c0_178], %137 {strides = array<i32>} : memref<216x384xf32, #tpu.memory_space<vmem>>, vector<8x384xf32>,
    %c0_179 = arith.constant 0 : index
    %c219_180 = arith.constant 219 : index
    %139 = vector.load %arg8[%c0_179, %c219_180] : memref<8x640xf32, #tpu.memory_space<vmem>>, vector<8x384xf32>
    %c160_181 = arith.constant 160 : index
    %c0_182 = arith.constant 0 : index
    %140 = vector.load %arg9[%c160_181, %c0_182] : memref<216x384xf32, #tpu.memory_space<vmem>>, vector<8x384xf32>
    tpu.vector_store %arg9[%c160_181, %c0_182], %139 {strides = array<i32>} : memref<216x384xf32, #tpu.memory_space<vmem>>, vector<8x384xf32>,
    %c0_183 = arith.constant 0 : index
    %c227_184 = arith.constant 227 : index
    %141 = vector.load %arg8[%c0_183, %c227_184] : memref<8x640xf32, #tpu.memory_space<vmem>>, vector<8x384xf32>
    %c168_185 = arith.constant 168 : index
    %c0_186 = arith.constant 0 : index
    %142 = vector.load %arg9[%c168_185, %c0_186] : memref<216x384xf32, #tpu.memory_space<vmem>>, vector<8x384xf32>
    tpu.vector_store %arg9[%c168_185, %c0_186], %141 {strides = array<i32>} : memref<216x384xf32, #tpu.memory_space<vmem>>, vector<8x384xf32>,
    %c0_187 = arith.constant 0 : index
    %c228_188 = arith.constant 228 : index
    %143 = vector.load %arg8[%c0_187, %c228_188] : memref<8x640xf32, #tpu.memory_space<vmem>>, vector<8x384xf32>
    %c176_189 = arith.constant 176 : index
    %c0_190 = arith.constant 0 : index
    %144 = vector.load %arg9[%c176_189, %c0_190] : memref<216x384xf32, #tpu.memory_space<vmem>>, vector<8x384xf32>
    tpu.vector_store %arg9[%c176_189, %c0_190], %143 {strides = array<i32>} : memref<216x384xf32, #tpu.memory_space<vmem>>, vector<8x384xf32>,
    %c0_191 = arith.constant 0 : index
    %c229_192 = arith.constant 229 : index
    %145 = vector.load %arg8[%c0_191, %c229_192] : memref<8x640xf32, #tpu.memory_space<vmem>>, vector<8x384xf32>
    %c184_193 = arith.constant 184 : index
    %c0_194 = arith.constant 0 : index
    %146 = vector.load %arg9[%c184_193, %c0_194] : memref<216x384xf32, #tpu.memory_space<vmem>>, vector<8x384xf32>
    tpu.vector_store %arg9[%c184_193, %c0_194], %145 {strides = array<i32>} : memref<216x384xf32, #tpu.memory_space<vmem>>, vector<8x384xf32>,
    %c0_195 = arith.constant 0 : index
    %c237_196 = arith.constant 237 : index
    %147 = vector.load %arg8[%c0_195, %c237_196] : memref<8x640xf32, #tpu.memory_space<vmem>>, vector<8x384xf32>
    %c192_197 = arith.constant 192 : index
    %c0_198 = arith.constant 0 : index
    %148 = vector.load %arg9[%c192_197, %c0_198] : memref<216x384xf32, #tpu.memory_space<vmem>>, vector<8x384xf32>
    tpu.vector_store %arg9[%c192_197, %c0_198], %147 {strides = array<i32>} : memref<216x384xf32, #tpu.memory_space<vmem>>, vector<8x384xf32>,
    %c0_199 = arith.constant 0 : index
    %c238_200 = arith.constant 238 : index
    %149 = vector.load %arg8[%c0_199, %c238_200] : memref<8x640xf32, #tpu.memory_space<vmem>>, vector<8x384xf32>
    %c200_201 = arith.constant 200 : index
    %c0_202 = arith.constant 0 : index
    %150 = vector.load %arg9[%c200_201, %c0_202] : memref<216x384xf32, #tpu.memory_space<vmem>>, vector<8x384xf32>
    tpu.vector_store %arg9[%c200_201, %c0_202], %149 {strides = array<i32>} : memref<216x384xf32, #tpu.memory_space<vmem>>, vector<8x384xf32>,
    %c0_203 = arith.constant 0 : index
    %c239_204 = arith.constant 239 : index
    %151 = vector.load %arg8[%c0_203, %c239_204] : memref<8x640xf32, #tpu.memory_space<vmem>>, vector<8x384xf32>
    %c208_205 = arith.constant 208 : index
    %c0_206 = arith.constant 0 : index
    %152 = vector.load %arg9[%c208_205, %c0_206] : memref<216x384xf32, #tpu.memory_space<vmem>>, vector<8x384xf32>
    tpu.vector_store %arg9[%c208_205, %c0_206], %151 {strides = array<i32>} : memref<216x384xf32, #tpu.memory_space<vmem>>, vector<8x384xf32>,
    %c0_207 = arith.constant 0 : index
    %c0_208 = arith.constant 0 : index
    %c0_209 = arith.constant 0 : index
    %153 = vector.load %arg4[%c0_207, %c0_208, %c0_209] : memref<1x8x216xbf16, #tpu.memory_space<vmem>>, vector<1x8x216xbf16>
    %154 = vector.shape_cast %153 : vector<1x8x216xbf16> to vector<8x216xbf16>
    %c0_210 = arith.constant 0 : index
    %c0_211 = arith.constant 0 : index
    %155 = vector.load %arg9[%c0_210, %c0_211] : memref<216x384xf32, #tpu.memory_space<vmem>>, vector<216x384xf32>
    %156 = arith.truncf %155 : vector<216x384xf32> to vector<216x384xbf16>
    %cst_212 = arith.constant dense<0.000000e+00> : vector<8x384xf32>
    %157 = tpu.matmul %154, %156, %cst_212 {dimension_numbers = #tpu.dot_dimension_numbers<[1], [0], [0], [1], [0, 0, 1, 1], [], []>} : vector<8x216xbf16>, vector<216x384xbf16>, vector<8x384xf32> -> vector<8x384xf32>
    %c0_213 = arith.constant 0 : index
    %c0_214 = arith.constant 0 : index
    %c128_215 = arith.constant 128 : index
    %158 = vector.load %arg1[%c0_213, %c0_214, %c128_215] : memref<1x8x640xf32, #tpu.memory_space<vmem>>, vector<1x8x384xf32>
    %159 = vector.shape_cast %158 : vector<1x8x384xf32> to vector<8x384xf32>
    %c0_216 = arith.constant 0 : index
    %c0_217 = arith.constant 0 : index
    %160 = vector.load %arg5[%c0_216, %c0_217] : memref<8x1xf32, #tpu.memory_space<vmem>>, vector<8x1xf32>
    %161 = vector.broadcast %160 : vector<8x1xf32> to vector<8x384xf32>
    %162 = arith.addf %157, %161 : vector<8x384xf32>
    %163 = arith.addf %162, %159 : vector<8x384xf32>
    %cst_218 = arith.constant 0.000000e+00 : f32
    %164 = vector.broadcast %cst_218 : f32 to vector<8x384xf32>
    %165 = arith.maximumf %163, %164 : vector<8x384xf32>
    %166 = arith.truncf %165 : vector<8x384xf32> to vector<8x384xbf16>
    %c0_219 = arith.constant 0 : index
    %c0_220 = arith.constant 0 : index
    %c0_221 = arith.constant 0 : index
    %167 = vector.load %arg7[%c0_219, %c0_220, %c0_221] : memref<1x8x384xbf16, #tpu.memory_space<vmem>>, vector<1x8x384xbf16>
    %168 = vector.shape_cast %167 : vector<1x8x384xbf16> to vector<8x384xbf16>
    %169 = vector.shape_cast %166 : vector<8x384xbf16> to vector<1x8x384xbf16>
    tpu.vector_store %arg7[%c0_219, %c0_220, %c0_221], %169 {strides = array<i32>} : memref<1x8x384xbf16, #tpu.memory_space<vmem>>, vector<1x8x384xbf16>,
    return
  }
  func.func @transform_0(%arg0: i32) -> (i32, i32, i32) {
    %c0_i32 = arith.constant 0 : i32
    %c0_i32_0 = arith.constant 0 : i32
    %c0_i32_1 = arith.constant 0 : i32
    return %arg0, %c0_i32, %c0_i32_0 : i32, i32, i32
  }
  func.func @transform_1(%arg0: i32) -> (i32, i32, i32) {
    %c0_i32 = arith.constant 0 : i32
    %c0_i32_0 = arith.constant 0 : i32
    %c0_i32_1 = arith.constant 0 : i32
    %c0_i32_2 = arith.constant 0 : i32
    return %c0_i32, %c0_i32_0, %c0_i32_1 : i32, i32, i32
  }
  func.func @transform_2(%arg0: i32) -> (i32, i32) {
    %c0_i32 = arith.constant 0 : i32
    %c0_i32_0 = arith.constant 0 : i32
    %c0_i32_1 = arith.constant 0 : i32
    return %c0_i32, %c0_i32_0 : i32, i32
  }
  func.func @transform_3(%arg0: i32) -> (i32, i32, i32) {
    %c0_i32 = arith.constant 0 : i32
    %c0_i32_0 = arith.constant 0 : i32
    %c0_i32_1 = arith.constant 0 : i32
    %c0_i32_2 = arith.constant 0 : i32
    return %c0_i32, %c0_i32_0, %c0_i32_1 : i32, i32, i32
  }
  func.func @transform_4(%arg0: i32) -> (i32, i32) {
    %c0_i32 = arith.constant 0 : i32
    %c0_i32_0 = arith.constant 0 : i32
    %c0_i32_1 = arith.constant 0 : i32
    return %c0_i32, %c0_i32_0 : i32, i32
  }
  func.func @transform_5(%arg0: i32) -> (i32, i32) {
    %c0_i32 = arith.constant 0 : i32
    %c0_i32_0 = arith.constant 0 : i32
    %c0_i32_1 = arith.constant 0 : i32
    return %c0_i32, %c0_i32_0 : i32, i32
  }
  func.func @transform_6(%arg0: i32) -> (i32, i32, i32) {
    %c0_i32 = arith.constant 0 : i32
    %c0_i32_0 = arith.constant 0 : i32
    %c0_i32_1 = arith.constant 0 : i32
    return %arg0, %c0_i32, %c0_i32_0 : i32, i32, i32
  }
}

</mosaic_0001>

<bundles_post_ra>
// kernel: basic_block3d_forward.1
= control target key start
LH: loop header
LB: loop body
LE: loop exit
PB: predicated region body
PF: predicated region fallthrough
CT: control target
= control target key end

     0   :  { %s2811_s21 = smov 0   ;;  %s3309_s0 = inlined_call_operand.vmem [shape: f32[2,8,640], index: 0, kind: input, shape index: {}]   ;;  %s3310_s1 = inlined_call_operand.vmem [shape: bf16[1,8,216], index: 1, kind: input, shape index: {}]   ;;  %s3311_s2 = inlined_call_operand.vmem [shape: f32[8,1], index: 2, kind: input, shape index: {}]   ;;  %s3312_s3 = inlined_call_operand.vmem [shape: bf16[1,8,216], index: 3, kind: input, shape index: {}]   ;;  %s3313_s4 = inlined_call_operand.vmem [shape: f32[8,1], index: 4, kind: input, shape index: {}]   ;;  %s3314_s5 = inlined_call_operand.vmem [shape: f32[1,384], index: 5, kind: input, shape index: {}]   ;;  %s3315_s6 = inlined_call_operand.vmem [shape: bf16[2,8,384], index: 6, kind: output, shape index: {}]  }
   0x1 LB: > { %s2158_s22 = sadd.s32 4294967295, %s2746_s21   ;;  %p2162_p0 = scmp.ge.s32.totalorder %s2746_s21, 1  ;;  %s2746_s21 = sphi %s2811_s21, %s16_s21  }
   0x2   : > { %p212_p1 = scmp.lt.s32.totalorder %s2746_s21, 3 }
   0x4   : > { %p213_p2 = pnand %p2162_p0, %p212_p1 }
   0x5   : > { %p242_p3 = scmp.lt.s32.totalorder (!%p213_p2), %s2158_s22, 1  ;;  %v2748_v0 = vmov (!%p213_p2), 0   ;;  %s2749_s27 = smov (!%p213_p2), 111   ;;  %v2913_v10 = vld [vmem:[%s3310_s1] sm:$0xff] (!%p213_p2)  ;;  %vm1073_vm0 = vcmask (!%p213_p2), 719872   ;;  %vm271_vm1 = vcmask (!%p213_p2), 908288  }
   0x6   : > { %216 = sbr.rel (%p213_p2) target bundleno = 918 (0x396), region = 44  ;;  %1128 = vmatprep.subr.bf16.mxu1 (!%p213_p2), %v2748_v0  ;;  %2474 = vset.pattern.permute.xlu1 (!%p213_p2), %v2748_v0  ;;  %s2750_s28 = smov (!%p213_p2), 110   ;;  %v2166_v11 = vcombine.high (!%p213_p2), %v2913_v10, %v2913_v10  ;;  %v1061_v12 = vld [vmem:[%s3311_s2] sm:$0xff] (!%p213_p2)  ;;  %vm297_vm2 = vcmask (!%p213_p2), 900096   ;;  %vm323_vm3 = vcmask (!%p213_p2), 891904   ;;  %vm349_vm4 = vcmask (!%p213_p2), 826368  }
   0x7   : > { %2735 = vset.pattern.permute.xlu0 (!%p213_p2), %v2748_v0  ;;  %s2751_s29 = smov (!%p213_p2), 109   ;;  %s2752_s30 = smov (!%p213_p2), 101   ;;  %vm375_vm5 = vcmask (!%p213_p2), 818176   ;;  %vm401_vm6 = vcmask (!%p213_p2), 809984   ;;  %vm427_vm7 = vcmask (!%p213_p2), 744448   ;;  %vm453_vm8 = vcmask (!%p213_p2), 736256  }
   0x8   : > { %s2753_s7 = smov (!%p213_p2), 100   ;;  %s2754_s8 = smov (!%p213_p2), 99   ;;  %2168 = vmatprep.mubr.msk.bf16.mxu0 (!%p213_p2), %vm1073_vm0, %v2166_v11  ;;  %2169 = vmatprep.mubr.msk.bf16.mxu1 (!%p213_p2), %vm1073_vm0, %v2166_v11  ;;  %vm479_vm9 = vcmask (!%p213_p2), 728064   ;;  %vm505_vm10 = vcmask (!%p213_p2), 89088   ;;  %vm3331_vm11 = vcmask (!%p213_p2), 80896   ;;  %vm557_vm12 = vcmask (!%p213_p2), 72704  }
   0x9   : > { %s2755_s9 = smov (!%p213_p2), 91   ;;  %s2756_s10 = smov (!%p213_p2), 90   ;;  %vm3330_vm13 = vcmask (!%p213_p2), 7168   ;;  %vm3332_vm14 = vcmask (!%p213_p2), 1039360   ;;  %vm3333_vm15 = vcmask (!%p213_p2), 973824  }
   0xa   : > { %s2757_s11 = smov (!%p213_p2), 89   ;;  %s2758_s12 = smov (!%p213_p2), 11  }
   0xb   : > { %s3347_s13 = smov (!%p213_p2), 10   ;;  %s3346_s14 = smov (!%p213_p2), 9  }
   0xc   : > { %s2761_s15 = smov (!%p213_p2), 1   ;;  %s3348_s16 = smov (!%p213_p2), 127  }
   0xd   : > { %s3400_s22 = smov (!%p242_p3, %s2158_s22), 1  ;;  %s3324_s17 = smov 119  }
   0xe   : > { %s2181_s23 = smul.u32 40, %s3400_s22  ;;  %s3318_s18 = smov 118  }
   0xf   : > { %s3316_s19 = smov 117   ;;  %s3322_s20 = smov 39  }
  0x10   : > { %s2825_s26 = scalar_lea.vmem %s3309_s0, %s2181_s23  ;;  %s3320_s23 = smov 38  }
  0x11   : > { %v2830_v1 = vld [vmem:[%s2825_s26 + $0x8] sm:$0xff]  ;;  %v2833_v2 = vld [vmem:[%s2825_s26 + $0x10] sm:$0xff]  ;;  %v255_v3 = vld [vmem:[%s2825_s26] sm:$0xff]  ;;  %s3326_s24 = smov 37   ;;  %s2769_s25 = smov 29  }
  0x12   : > { %v2839_v4 = vpack.i.bf16 %v2833_v2, %v2830_v1  ;;  %v2842_v5 = vld [vmem:[%s2825_s26 + $0x18] sm:$0xff]  ;;  %v602_v8 = vld [vmem:[%s2825_s26 + $0x20] sm:$0xff] }
  0x13   : > { %v2229_v6 = vpack.i.bf16 %v2842_v5, %v255_v3  ;;  %v2349_v7 = vpack.i.bf16 %v2842_v5, %v2833_v2  ;;  %v2359_v9 = vpack.i.bf16 %v602_v8, %v2830_v1 }
  0x14   : > { %2220 = vrot.lane.b32.xlu0 %v2839_v4, %s2749_s27 }
  0x15   : > { %2230 = vrot.lane.b32.xlu1 %v2229_v6, %s2749_s27 }
  0x18   : > { %2225 = vrot.lane.b32.xlu0 %v2839_v4, %s2750_s28 }
  0x19   : > { %2235 = vrot.lane.b32.xlu1 %v2229_v6, %s2750_s28 }
  0x1c   : > { %2240 = vrot.lane.b32.xlu0 %v2839_v4, %s2751_s29 }
  0x1d   : > { %2245 = vrot.lane.b32.xlu1 %v2839_v4, %s2752_s30 }
  0x20   : > { %2250 = vrot.lane.b32.xlu0 %v2229_v6, %s2751_s29 }
  0x21   : > { %2255 = vrot.lane.b32.xlu1 %v2229_v6, %s2752_s30 }
  0x24   : > { %2260 = vrot.lane.b32.xlu0 %v2839_v4, %s2753_s7 }
  0x25   : > { %2265 = vrot.lane.b32.xlu1 %v2839_v4, %s2754_s8 }
  0x28   : > { %2270 = vrot.lane.b32.xlu0 %v2229_v6, %s2753_s7 }
  0x29   : > { %2275 = vrot.lane.b32.xlu1 %v2229_v6, %s2754_s8 }
  0x2c   : > { %2280 = vrot.lane.b32.xlu0 %v2839_v4, %s2755_s9 }
  0x2d   : > { %2285 = vrot.lane.b32.xlu1 %v2839_v4, %s2756_s10 }
  0x30   : > { %2290 = vrot.lane.b32.xlu0 %v2229_v6, %s2755_s9 }
  0x31   : > { %2295 = vrot.lane.b32.xlu1 %v2229_v6, %s2756_s10 }
  0x34   : > { %2300 = vrot.lane.b32.xlu0 %v2839_v4, %s2757_s11 }
  0x35   : > { %2305 = vrot.lane.b32.xlu1 %v2839_v4, %s2758_s12 }
  0x38   : > { %2310 = vrot.lane.b32.xlu0 %v2229_v6, %s2757_s11 }
  0x39   : > { %2315 = vrot.lane.b32.xlu1 %v2229_v6, %s2758_s12 }
  0x3c   : > { %2320 = vrot.lane.b32.xlu0 %v2839_v4, %s3347_s13 }
  0x3d   : > { %2325 = vrot.lane.b32.xlu1 %v2839_v4, %s3346_s14 }
  0x40   : > { %2330 = vrot.lane.b32.xlu0 %v2229_v6, %s3347_s13 }
  0x41   : > { %2335 = vrot.lane.b32.xlu1 %v2229_v6, %s3346_s14 }
  0x44   : > { %2340 = vrot.lane.b32.xlu0 %v2839_v4, %s2761_s15 }
  0x45   : > { %2345 = vrot.lane.b32.xlu1 %v2229_v6, %s2761_s15 }
  0x48   : > { %2350 = vrot.lane.b32.xlu0 %v2349_v7, %s3348_s16 }
  0x49   : > { %2355 = vrot.lane.b32.xlu1 %v2349_v7, %s3324_s17 }
  0x4c   : > { %2360 = vrot.lane.b32.xlu0 %v2359_v9, %s3348_s16 }
  0x4d   : > { %2365 = vrot.lane.b32.xlu1 %v2359_v9, %s3324_s17  ;;  %s3350_s17 = smov 119  }
  0x50   : > { %2370 = vrot.lane.b32.xlu0 %v2349_v7, %s3318_s18 }
  0x51   : > { %2375 = vrot.lane.b32.xlu1 %v2349_v7, %s3316_s19 }
  0x54   : > { %2380 = vrot.lane.b32.xlu0 %v2359_v9, %s3318_s18  ;;  %s3328_s18 = smov 27  }
  0x55   : > { %2385 = vrot.lane.b32.xlu1 %v2359_v9, %s3316_s19  ;;  %s2770_s19 = smov 28  }
  0x58   : > { %2390 = vrot.lane.b32.xlu0 %v2349_v7, %s3322_s20 }
  0x59   : > { %2395 = vrot.lane.b32.xlu1 %v2349_v7, %s3320_s23 }
  0x5c   : > { %2400 = vrot.lane.b32.xlu0 %v2359_v9, %s3322_s20  ;;  %s3344_s20 = smov 18  }
  0x5d   : > { %2405 = vrot.lane.b32.xlu1 %v2359_v9, %s3320_s23  ;;  %s3349_s23 = smov 19  }
  0x60   : > { %2410 = vrot.lane.b32.xlu0 %v2349_v7, %s3326_s24 }
  0x61   : > { %2415 = vrot.lane.b32.xlu1 %v2349_v7, %s2769_s25 }
  0x64   : > { %2420 = vrot.lane.b32.xlu0 %v2359_v9, %s3326_s24  ;;  %s3351_s24 = smov 118  }
  0x65   : > { %2425 = vrot.lane.b32.xlu1 %v2359_v9, %s2769_s25 }
  0x68   : > { %2430 = vrot.lane.b32.xlu0 %v2349_v7, %s2770_s19 }
  0x69   : > { %2435 = vrot.lane.b32.xlu1 %v2349_v7, %s3328_s18 }
  0x6c   : > { %2440 = vrot.lane.b32.xlu0 %v2359_v9, %s2770_s19 }
  0x6d   : > { %2445 = vrot.lane.b32.xlu1 %v2359_v9, %s3328_s18  ;;  %s3342_s18 = smov 17  }
  0x70   : > { %2450 = vrot.lane.b32.xlu0 %v2349_v7, %s3349_s23 }
  0x71   : > { %2455 = vrot.lane.b32.xlu1 %v2349_v7, %s3344_s20 }
  0x74   : > { %2460 = vrot.lane.b32.xlu0 %v2359_v9, %s3349_s23 }
  0x75   : > { %2465 = vrot.lane.b32.xlu1 %v2359_v9, %s3344_s20  ;;  %s3353_s20 = smov 39  }
  0x78   : > { %2470 = vrot.lane.b32.xlu0 %v2839_v4, %s3342_s18 }
  0x79   : > { %923 = vrot.lane.b32.xlu1 %v2842_v5, %s3342_s18 }
  0x7c   : > { %925 = vrot.lane.b32.xlu0 %v602_v8, %s3342_s18  ;;  %s3352_s18 = smov 117  }
  0x7d   : > { %1064 = vperm.xlu1 %2474, %v1061_v12  }
  0x86   : > { %v2221_v13 = vpop.permute.xlu0 %2220 }
  0x87   : > { %v2231_v14 = vpop.permute.xlu1 %2230  ;;  %v2223_v15 = vunpack.i.h.bf16 %v2221_v13  ;;  %v2222_v16 = vunpack.i.l.bf16 %v2221_v13 }
  0x88   : > { %v2233_v17 = vunpack.i.h.bf16 %v2231_v14  ;;  %v2232_v18 = vunpack.i.l.bf16 %v2231_v14 }
  0x89   : > { %v273_v25 = vsel %vm271_vm1, %v2222_v16, %v2223_v15 }
  0x8a   : > { %v2226_v19 = vpop.permute.xlu0 %2225  ;;  %v274_v27 = vsel %vm271_vm1, %v2223_v15, %v2233_v17  ;;  %v272_v31 = vsel %vm271_vm1, %v2232_v18, %v2222_v16 }
  0x8b   : > { %v2228_v20 = vunpack.i.h.bf16 %v2226_v19  ;;  %v2227_v21 = vunpack.i.l.bf16 %v2226_v19  ;;  %v2236_v22 = vpop.permute.xlu1 %2235 }
  0x8c   : > { %v2238_v23 = vunpack.i.h.bf16 %v2236_v22  ;;  %v2237_v24 = vunpack.i.l.bf16 %v2236_v22 }
  0x8d   : > { %v299_v26 = vsel %vm297_vm2, %v2227_v21, %v2228_v20 }
  0x8e   : > { %v2241_v28 = vpop.permute.xlu0 %2240  ;;  %v1020_v29 = vpack.c.bf16 %v299_v26, %v273_v25  ;;  %v300_v30 = vsel %vm297_vm2, %v2228_v20, %v2238_v23  ;;  %v298_v32 = vsel %vm297_vm2, %v2237_v24, %v2227_v21 }
  0x8f   : > { %v2243_v33 = vunpack.i.h.bf16 %v2241_v28  ;;  %v2242_v34 = vunpack.i.l.bf16 %v2241_v28  ;;  %v2246_v35 = vpop.permute.xlu1 %2245  ;;  %v1021_v36 = vpack.c.bf16 %v300_v30, %v274_v27  ;;  %v1019_v37 = vpack.c.bf16 %v298_v32, %v272_v31 }
  0x90   : > { %v2248_v38 = vunpack.i.h.bf16 %v2246_v35  ;;  %v2247_v39 = vunpack.i.l.bf16 %v2246_v35  ;;  %1087 = vmatprep.subr.bf16.mxu0 %v1020_v29 }
  0x91   : > { %1129 = vmatpush1.bf16.msra.mxu1 %v1021_v36  ;;  %1088 = vmatpush1.bf16.msra.mxu0 %v1019_v37  ;;  %v325_v40 = vsel %vm323_vm3, %v2242_v34, %v2243_v33 }
  0x92   : > { %v2251_v41 = vpop.permute.xlu0 %2250  ;;  %v351_v42 = vsel %vm349_vm4, %v2247_v39, %v2248_v38  ;;  %1130 = vmatprep.subr.bf16.mxu1 %v2748_v0 }
  0x93   : > { %v2253_v43 = vunpack.i.h.bf16 %v2251_v41  ;;  %v2252_v44 = vunpack.i.l.bf16 %v2251_v41  ;;  %v2256_v45 = vpop.permute.xlu1 %2255  ;;  %v1023_v46 = vpack.c.bf16 %v351_v42, %v325_v40 }
  0x94   : > { %v2258_v47 = vunpack.i.h.bf16 %v2256_v45  ;;  %v2257_v48 = vunpack.i.l.bf16 %v2256_v45 }
  0x95   : > { %1089 = vmatprep.subr.bf16.mxu0 %v1023_v46  ;;  %v324_v49 = vsel %vm323_vm3, %v2252_v44, %v2242_v34  ;;  %v326_v50 = vsel %vm323_vm3, %v2243_v33, %v2253_v43 }
  0x96   : > { %v2261_v51 = vpop.permute.xlu0 %2260  ;;  %v350_v52 = vsel %vm349_vm4, %v2257_v48, %v2247_v39  ;;  %v352_v53 = vsel %vm349_vm4, %v2248_v38, %v2258_v47 }
  0x97   : > { %v2263_v54 = vunpack.i.h.bf16 %v2261_v51  ;;  %v2262_v55 = vunpack.i.l.bf16 %v2261_v51  ;;  %v2266_v56 = vpop.permute.xlu1 %2265  ;;  %v1022_v57 = vpack.c.bf16 %v350_v52, %v324_v49  ;;  %v1024_v58 = vpack.c.bf16 %v352_v53, %v326_v50 }
  0x98   : > { %v2268_v59 = vunpack.i.h.bf16 %v2266_v56  ;;  %v2267_v60 = vunpack.i.l.bf16 %v2266_v56 }
  0x99   : > { %1090 = vmatpush1.bf16.msra.mxu0 %v1022_v57  ;;  %1131 = vmatpush1.bf16.msra.mxu1 %v1024_v58  ;;  %v377_v61 = vsel %vm375_vm5, %v2262_v55, %v2263_v54 }
  0x9a   : > { %v2271_v62 = vpop.permute.xlu0 %2270  ;;  %v403_v63 = vsel %vm401_vm6, %v2267_v60, %v2268_v59  ;;  %1132 = vmatprep.subr.bf16.mxu1 %v2748_v0 }
  0x9b   : > { %v2273_v3 = vunpack.i.h.bf16 %v2271_v62  ;;  %v2272_v4 = vunpack.i.l.bf16 %v2271_v62  ;;  %v2276_v6 = vpop.permute.xlu1 %2275  ;;  %v1026_v7 = vpack.c.bf16 %v403_v63, %v377_v61 }
  0x9c   : > { %v2278_v8 = vunpack.i.h.bf16 %v2276_v6  ;;  %v2277_v9 = vunpack.i.l.bf16 %v2276_v6 }
  0x9d   : > { %1091 = vmatprep.subr.bf16.mxu0 %v1026_v7  ;;  %v376_v11 = vsel %vm375_vm5, %v2272_v4, %v2262_v55  ;;  %v378_v12 = vsel %vm375_vm5, %v2263_v54, %v2273_v3 }
  0x9e   : > { %v2281_v13 = vpop.permute.xlu0 %2280  ;;  %v402_v14 = vsel %vm401_vm6, %v2277_v9, %v2267_v60  ;;  %v404_v15 = vsel %vm401_vm6, %v2268_v59, %v2278_v8 }
  0x9f   : > { %v2283_v16 = vunpack.i.h.bf16 %v2281_v13  ;;  %v2282_v17 = vunpack.i.l.bf16 %v2281_v13  ;;  %v2286_v18 = vpop.permute.xlu1 %2285  ;;  %v1025_v19 = vpack.c.bf16 %v402_v14, %v376_v11  ;;  %v1027_v20 = vpack.c.bf16 %v404_v15, %v378_v12 }
  0xa0   : > { %v2288_v21 = vunpack.i.h.bf16 %v2286_v18  ;;  %v2287_v22 = vunpack.i.l.bf16 %v2286_v18 }
  0xa1   : > { %1092 = vmatpush1.bf16.msra.mxu0 %v1025_v19  ;;  %1133 = vmatpush1.bf16.msra.mxu1 %v1027_v20  ;;  %v429_v23 = vsel %vm427_vm7, %v2282_v17, %v2283_v16 }
  0xa2   : > { %v2291_v24 = vpop.permute.xlu0 %2290  ;;  %v455_v25 = vsel %vm453_vm8, %v2287_v22, %v2288_v21  ;;  %1134 = vmatprep.subr.bf16.mxu1 %v2748_v0 }
  0xa3   : > { %v2293_v26 = vunpack.i.h.bf16 %v2291_v24  ;;  %v2292_v27 = vunpack.i.l.bf16 %v2291_v24  ;;  %v2296_v28 = vpop.permute.xlu1 %2295  ;;  %v1029_v29 = vpack.c.bf16 %v455_v25, %v429_v23 }
  0xa4   : > { %v2298_v30 = vunpack.i.h.bf16 %v2296_v28  ;;  %v2297_v31 = vunpack.i.l.bf16 %v2296_v28 }
  0xa5   : > { %1093 = vmatprep.subr.bf16.mxu0 %v1029_v29  ;;  %v428_v32 = vsel %vm427_vm7, %v2292_v27, %v2282_v17  ;;  %v430_v33 = vsel %vm427_vm7, %v2283_v16, %v2293_v26 }
  0xa6   : > { %v2301_v34 = vpop.permute.xlu0 %2300  ;;  %v454_v35 = vsel %vm453_vm8, %v2297_v31, %v2287_v22  ;;  %v456_v36 = vsel %vm453_vm8, %v2288_v21, %v2298_v30 }
  0xa7   : > { %v2303_v37 = vunpack.i.h.bf16 %v2301_v34  ;;  %v2302_v38 = vunpack.i.l.bf16 %v2301_v34  ;;  %v2306_v39 = vpop.permute.xlu1 %2305  ;;  %v1028_v40 = vpack.c.bf16 %v454_v35, %v428_v32  ;;  %v1030_v41 = vpack.c.bf16 %v456_v36, %v430_v33 }
  0xa8   : > { %v2308_v42 = vunpack.i.h.bf16 %v2306_v39  ;;  %v2307_v43 = vunpack.i.l.bf16 %v2306_v39 }
  0xa9   : > { %1094 = vmatpush1.bf16.msra.mxu0 %v1028_v40  ;;  %1135 = vmatpush1.bf16.msra.mxu1 %v1030_v41  ;;  %v481_v44 = vsel %vm479_vm9, %v2302_v38, %v2303_v37 }
  0xaa   : > { %v2311_v45 = vpop.permute.xlu0 %2310  ;;  %v507_v46 = vsel %vm505_vm10, %v2307_v43, %v2308_v42  ;;  %1136 = vmatprep.subr.bf16.mxu1 %v2748_v0 }
  0xab   : > { %v2313_v47 = vunpack.i.h.bf16 %v2311_v45  ;;  %v2312_v48 = vunpack.i.l.bf16 %v2311_v45  ;;  %v2316_v49 = vpop.permute.xlu1 %2315  ;;  %v1032_v50 = vpack.c.bf16 %v507_v46, %v481_v44 }
  0xac   : > { %v2318_v51 = vunpack.i.h.bf16 %v2316_v49  ;;  %v2317_v52 = vunpack.i.l.bf16 %v2316_v49 }
  0xad   : > { %1095 = vmatprep.subr.bf16.mxu0 %v1032_v50  ;;  %v480_v53 = vsel %vm479_vm9, %v2312_v48, %v2302_v38  ;;  %v482_v54 = vsel %vm479_vm9, %v2303_v37, %v2313_v47 }
  0xae   : > { %v2321_v55 = vpop.permute.xlu0 %2320  ;;  %v506_v56 = vsel %vm505_vm10, %v2317_v52, %v2307_v43  ;;  %v508_v57 = vsel %vm505_vm10, %v2308_v42, %v2318_v51 }
  0xaf   : > { %v2323_v58 = vunpack.i.h.bf16 %v2321_v55  ;;  %v2322_v59 = vunpack.i.l.bf16 %v2321_v55  ;;  %v2326_v60 = vpop.permute.xlu1 %2325  ;;  %v1031_v61 = vpack.c.bf16 %v506_v56, %v480_v53  ;;  %v1033_v62 = vpack.c.bf16 %v508_v57, %v482_v54 }
  0xb0   : > { %v2328_v63 = vunpack.i.h.bf16 %v2326_v60  ;;  %v2327_v3 = vunpack.i.l.bf16 %v2326_v60 }
  0xb1   : > { %1096 = vmatpush1.bf16.msra.mxu0 %v1031_v61  ;;  %1137 = vmatpush1.bf16.msra.mxu1 %v1033_v62  ;;  %v533_v4 = vsel %vm3331_vm11, %v2322_v59, %v2323_v58 }
  0xb2   : > { %v2331_v6 = vpop.permute.xlu0 %2330  ;;  %v559_v7 = vsel %vm557_vm12, %v2327_v3, %v2328_v63  ;;  %1138 = vmatprep.subr.bf16.mxu1 %v2748_v0 }
  0xb3   : > { %v2333_v8 = vunpack.i.h.bf16 %v2331_v6  ;;  %v2332_v9 = vunpack.i.l.bf16 %v2331_v6  ;;  %v2336_v11 = vpop.permute.xlu1 %2335  ;;  %v1035_v12 = vpack.c.bf16 %v559_v7, %v533_v4 }
  0xb4   : > { %v2338_v13 = vunpack.i.h.bf16 %v2336_v11  ;;  %v2337_v14 = vunpack.i.l.bf16 %v2336_v11 }
  0xb5   : > { %1097 = vmatprep.subr.bf16.mxu0 %v1035_v12  ;;  %v532_v15 = vsel %vm3331_vm11, %v2332_v9, %v2322_v59  ;;  %v534_v16 = vsel %vm3331_vm11, %v2323_v58, %v2333_v8  ;;  %vm3335_vm11 = vcmask 957440  }
  0xb6   : > { %v2341_v17 = vpop.permute.xlu0 %2340  ;;  %v558_v18 = vsel %vm557_vm12, %v2337_v14, %v2327_v3  ;;  %v560_v19 = vsel %vm557_vm12, %v2328_v63, %v2338_v13 }
  0xb7   : > { %v2343_v20 = vunpack.i.h.bf16 %v2341_v17  ;;  %v2342_v21 = vunpack.i.l.bf16 %v2341_v17  ;;  %v2346_v22 = vpop.permute.xlu1 %2345  ;;  %v1034_v23 = vpack.c.bf16 %v558_v18, %v532_v15  ;;  %v1036_v24 = vpack.c.bf16 %v560_v19, %v534_v16 }
  0xb8   : > { %v2348_v25 = vunpack.i.h.bf16 %v2346_v22  ;;  %v2347_v26 = vunpack.i.l.bf16 %v2346_v22 }
  0xb9   : > { %1098 = vmatpush1.bf16.msra.mxu0 %v1034_v23  ;;  %1139 = vmatpush1.bf16.msra.mxu1 %v1036_v24  ;;  %v585_v27 = vsel %vm3330_vm13, %v2342_v21, %v2343_v20 }
  0xba   : > { %v2351_v28 = vpop.permute.xlu0 %2350  ;;  %1140 = vmatprep.subr.bf16.mxu1 %v2748_v0  ;;  %v1038_v29 = vpack.c.bf16 %v2833_v2, %v585_v27  ;;  %v586_v30 = vsel %vm3330_vm13, %v2343_v20, %v2348_v25  ;;  %v584_v31 = vsel %vm3330_vm13, %v2347_v26, %v2342_v21  ;;  %vm3334_vm13 = vcmask 965632  }
  0xbb   : > { %v2353_v32 = vunpack.i.h.bf16 %v2351_v28  ;;  %v2352_v33 = vunpack.i.l.bf16 %v2351_v28  ;;  %v2356_v34 = vpop.permute.xlu1 %2355  ;;  %v1039_v35 = vpack.c.bf16 %v2842_v5, %v586_v30  ;;  %v1037_v36 = vpack.c.bf16 %v2830_v1, %v584_v31 }
  0xbc   : > { %v2358_v37 = vunpack.i.h.bf16 %v2356_v34  ;;  %v2357_v38 = vunpack.i.l.bf16 %v2356_v34  ;;  %1099 = vmatprep.subr.bf16.mxu0 %v1038_v29 }
  0xbd   : > { %1141 = vmatpush1.bf16.msra.mxu1 %v1039_v35  ;;  %1100 = vmatpush1.bf16.msra.mxu0 %v1037_v36  ;;  %v617_v39 = vsel %vm3332_vm14, %v2352_v33, %v2353_v32 }
  0xbe   : > { %v2361_v2 = vpop.permute.xlu0 %2360  ;;  %v643_v40 = vsel %vm3333_vm15, %v2357_v38, %v2358_v37  ;;  %1142 = vmatprep.subr.bf16.mxu1 %v2748_v0 }
  0xbf   : > { %v2363_v41 = vunpack.i.h.bf16 %v2361_v2  ;;  %v2362_v42 = vunpack.i.l.bf16 %v2361_v2  ;;  %v2366_v43 = vpop.permute.xlu1 %2365  ;;  %v1041_v44 = vpack.c.bf16 %v643_v40, %v617_v39 }
  0xc0   : > { %v2368_v45 = vunpack.i.h.bf16 %v2366_v43  ;;  %v2367_v5 = vunpack.i.l.bf16 %v2366_v43 }
  0xc1   : > { %1101 = vmatprep.subr.bf16.mxu0 %v1041_v44  ;;  %v616_v1 = vsel %vm3332_vm14, %v2362_v42, %v2352_v33  ;;  %v618_v46 = vsel %vm3332_vm14, %v2353_v32, %v2363_v41  ;;  %vm3336_vm14 = vcmask 318464  }
  0xc2   : > { %v2371_v47 = vpop.permute.xlu0 %2370  ;;  %v642_v48 = vsel %vm3333_vm15, %v2367_v5, %v2357_v38  ;;  %v644_v49 = vsel %vm3333_vm15, %v2358_v37, %v2368_v45  ;;  %vm3337_vm15 = vcmask 310272  }
  0xc3   : > { %v2373_v50 = vunpack.i.h.bf16 %v2371_v47  ;;  %v2372_v51 = vunpack.i.l.bf16 %v2371_v47  ;;  %v2376_v52 = vpop.permute.xlu1 %2375  ;;  %v1040_v53 = vpack.c.bf16 %v642_v48, %v616_v1  ;;  %v1042_v54 = vpack.c.bf16 %v644_v49, %v618_v46 }
  0xc4   : > { %v2378_v55 = vunpack.i.h.bf16 %v2376_v52  ;;  %v2377_v56 = vunpack.i.l.bf16 %v2376_v52 }
  0xc5   : > { %1102 = vmatpush1.bf16.msra.mxu0 %v1040_v53  ;;  %1143 = vmatpush1.bf16.msra.mxu1 %v1042_v54  ;;  %v669_v57 = vsel %vm3334_vm13, %v2372_v51, %v2373_v50 }
  0xc6   : > { %v2381_v58 = vpop.permute.xlu0 %2380  ;;  %v695_v59 = vsel %vm3335_vm11, %v2377_v56, %v2378_v55  ;;  %1144 = vmatprep.subr.bf16.mxu1 %v2748_v0 }
  0xc7   : > { %v2383_v60 = vunpack.i.h.bf16 %v2381_v58  ;;  %v2382_v61 = vunpack.i.l.bf16 %v2381_v58  ;;  %v2386_v62 = vpop.permute.xlu1 %2385  ;;  %v1044_v63 = vpack.c.bf16 %v695_v59, %v669_v57 }
  0xc8   : > { %v2388_v3 = vunpack.i.h.bf16 %v2386_v62  ;;  %v2387_v4 = vunpack.i.l.bf16 %v2386_v62 }
  0xc9   : > { %1103 = vmatprep.subr.bf16.mxu0 %v1044_v63  ;;  %v668_v6 = vsel %vm3334_vm13, %v2382_v61, %v2372_v51  ;;  %v670_v7 = vsel %vm3334_vm13, %v2373_v50, %v2383_v60  ;;  %vm3338_vm13 = vcmask 302080  }
  0xca   : > { %v2391_v8 = vpop.permute.xlu0 %2390  ;;  %v694_v9 = vsel %vm3335_vm11, %v2387_v4, %v2377_v56  ;;  %v696_v11 = vsel %vm3335_vm11, %v2378_v55, %v2388_v3  ;;  %vm3339_vm11 = vcmask 236544  }
  0xcb   : > { %v2393_v12 = vunpack.i.h.bf16 %v2391_v8  ;;  %v2392_v13 = vunpack.i.l.bf16 %v2391_v8  ;;  %v2396_v14 = vpop.permute.xlu1 %2395  ;;  %v1043_v15 = vpack.c.bf16 %v694_v9, %v668_v6  ;;  %v1045_v16 = vpack.c.bf16 %v696_v11, %v670_v7 }
  0xcc   : > { %v2398_v17 = vunpack.i.h.bf16 %v2396_v14  ;;  %v2397_v18 = vunpack.i.l.bf16 %v2396_v14 }
  0xcd   : > { %1104 = vmatpush1.bf16.msra.mxu0 %v1043_v15  ;;  %1145 = vmatpush1.bf16.msra.mxu1 %v1045_v16  ;;  %v721_v19 = vsel %vm3336_vm14, %v2392_v13, %v2393_v12 }
  0xce   : > { %v2401_v20 = vpop.permute.xlu0 %2400  ;;  %v747_v21 = vsel %vm3337_vm15, %v2397_v18, %v2398_v17  ;;  %1146 = vmatprep.subr.bf16.mxu1 %v2748_v0 }
  0xcf   : > { %v2403_v22 = vunpack.i.h.bf16 %v2401_v20  ;;  %v2402_v23 = vunpack.i.l.bf16 %v2401_v20  ;;  %v2406_v24 = vpop.permute.xlu1 %2405  ;;  %v1047_v25 = vpack.c.bf16 %v747_v21, %v721_v19 }
  0xd0   : > { %v2408_v26 = vunpack.i.h.bf16 %v2406_v24  ;;  %v2407_v27 = vunpack.i.l.bf16 %v2406_v24 }
  0xd1   : > { %1105 = vmatprep.subr.bf16.mxu0 %v1047_v25  ;;  %v720_v28 = vsel %vm3336_vm14, %v2402_v23, %v2392_v13  ;;  %v722_v29 = vsel %vm3336_vm14, %v2393_v12, %v2403_v22  ;;  %vm3340_vm14 = vcmask 228352  }
  0xd2   : > { %v2411_v30 = vpop.permute.xlu0 %2410  ;;  %v746_v31 = vsel %vm3337_vm15, %v2407_v27, %v2397_v18  ;;  %v748_v32 = vsel %vm3337_vm15, %v2398_v17, %v2408_v26  ;;  %vm3341_vm15 = vcmask 220160  }
  0xd3   : > { %v2413_v33 = vunpack.i.h.bf16 %v2411_v30  ;;  %v2412_v34 = vunpack.i.l.bf16 %v2411_v30  ;;  %v2416_v35 = vpop.permute.xlu1 %2415  ;;  %v1046_v36 = vpack.c.bf16 %v746_v31, %v720_v28  ;;  %v1048_v37 = vpack.c.bf16 %v748_v32, %v722_v29 }
  0xd4   : > { %v2418_v38 = vunpack.i.h.bf16 %v2416_v35  ;;  %v2417_v39 = vunpack.i.l.bf16 %v2416_v35 }
  0xd5   : > { %1106 = vmatpush1.bf16.msra.mxu0 %v1046_v36  ;;  %1147 = vmatpush1.bf16.msra.mxu1 %v1048_v37  ;;  %v773_v2 = vsel %vm3338_vm13, %v2412_v34, %v2413_v33 }
  0xd6   : > { %v2421_v40 = vpop.permute.xlu0 %2420  ;;  %v799_v41 = vsel %vm3339_vm11, %v2417_v39, %v2418_v38  ;;  %1148 = vmatprep.subr.bf16.mxu1 %v2748_v0 }
  0xd7   : > { %v2423_v42 = vunpack.i.h.bf16 %v2421_v40  ;;  %v2422_v43 = vunpack.i.l.bf16 %v2421_v40  ;;  %v2426_v44 = vpop.permute.xlu1 %2425  ;;  %v1050_v45 = vpack.c.bf16 %v799_v41, %v773_v2 }
  0xd8   : > { %v2428_v5 = vunpack.i.h.bf16 %v2426_v44  ;;  %v2427_v1 = vunpack.i.l.bf16 %v2426_v44 }
  0xd9   : > { %1107 = vmatprep.subr.bf16.mxu0 %v1050_v45  ;;  %v772_v46 = vsel %vm3338_vm13, %v2422_v43, %v2412_v34  ;;  %v774_v47 = vsel %vm3338_vm13, %v2413_v33, %v2423_v42  ;;  %vm875_vm13 = vcmask 154624  }
  0xda   : > { %v2431_v48 = vpop.permute.xlu0 %2430  ;;  %v798_v49 = vsel %vm3339_vm11, %v2427_v1, %v2417_v39  ;;  %v800_v50 = vsel %vm3339_vm11, %v2418_v38, %v2428_v5  ;;  %vm901_vm11 = vcmask 146432   ;;  %v2165_v5 = vcombine.low %v2913_v10, %v2913_v10 }
  0xdb   : > { %v2433_v51 = vunpack.i.h.bf16 %v2431_v48  ;;  %v2432_v52 = vunpack.i.l.bf16 %v2431_v48  ;;  %v2436_v53 = vpop.permute.xlu1 %2435  ;;  %v1049_v54 = vpack.c.bf16 %v798_v49, %v772_v46  ;;  %v1051_v55 = vpack.c.bf16 %v800_v50, %v774_v47  ;;  %v1171_v50 = vld [vmem:[%s3314_s5] sm:$0x7] }
  0xdc   : > { %v2438_v56 = vunpack.i.h.bf16 %v2436_v53  ;;  %v2437_v57 = vunpack.i.l.bf16 %v2436_v53  ;;  %v1173_v46 = vlaneseq }
  0xdd   : > { %1108 = vmatpush1.bf16.msra.mxu0 %v1049_v54  ;;  %1149 = vmatpush1.bf16.msra.mxu1 %v1051_v55  ;;  %v825_v58 = vsel %vm3340_vm14, %v2432_v52, %v2433_v51 }
  0xde   : > { %v2441_v59 = vpop.permute.xlu0 %2440  ;;  %v851_v60 = vsel %vm3341_vm15, %v2437_v57, %v2438_v56  ;;  %1150 = vmatprep.subr.bf16.mxu1 %v2748_v0  ;;  %v1174_v47 = vshrl.u32 %v1173_v46, 7 }
  0xdf   : > { %v2443_v61 = vunpack.i.h.bf16 %v2441_v59  ;;  %v2442_v62 = vunpack.i.l.bf16 %v2441_v59  ;;  %v2446_v63 = vpop.permute.xlu1 %2445  ;;  %v1053_v3 = vpack.c.bf16 %v851_v60, %v825_v58 }
  0xe0   : > { %v2448_v4 = vunpack.i.h.bf16 %v2446_v63  ;;  %v2447_v6 = vunpack.i.l.bf16 %v2446_v63  ;;  %v1183_v48 = vsub.s32 2, %v1174_v47 }
  0xe1   : > { %1109 = vmatprep.subr.bf16.mxu0 %v1053_v3  ;;  %v824_v7 = vsel %vm3340_vm14, %v2442_v62, %v2432_v52  ;;  %v826_v8 = vsel %vm3340_vm14, %v2433_v51, %v2443_v61  ;;  %vm927_vm14 = vcmask 138240   ;;  %v2775_v62 = vmov 0.0  }
  0xe2   : > { %v2451_v9 = vpop.permute.xlu0 %2450  ;;  %v850_v11 = vsel %vm3341_vm15, %v2447_v6, %v2437_v57  ;;  %v852_v12 = vsel %vm3341_vm15, %v2438_v56, %v2448_v4  ;;  %vm1077_vm15 = vcmask 1043456   ;;  %v1184_v55 = vrot.slane %v1171_v50, %v1183_v48 }
  0xe3   : > { %v2453_v13 = vunpack.i.h.bf16 %v2451_v9  ;;  %v2452_v14 = vunpack.i.l.bf16 %v2451_v9  ;;  %v2456_v15 = vpop.permute.xlu1 %2455  ;;  %v1052_v16 = vpack.c.bf16 %v850_v11, %v824_v7  ;;  %v1054_v17 = vpack.c.bf16 %v852_v12, %v826_v8 }
  0xe4   : > { %v2458_v18 = vunpack.i.h.bf16 %v2456_v15  ;;  %v2457_v19 = vunpack.i.l.bf16 %v2456_v15  ;;  %v1175_v3 = vsub.s32 0, %v1174_v47  ;;  %v1179_v12 = vsub.s32 1, %v1174_v47 }
  0xe5   : > { %1110 = vmatpush1.bf16.msra.mxu0 %v1052_v16  ;;  %1151 = vmatpush1.bf16.msra.mxu1 %v1054_v17  ;;  %v877_v20 = vsel %vm875_vm13, %v2452_v14, %v2453_v13 }
  0xe6   : > { %v2461_v21 = vpop.permute.xlu0 %2460  ;;  %v903_v22 = vsel %vm901_vm11, %v2457_v19, %v2458_v18  ;;  %1152 = vmatprep.subr.bf16.mxu1 %v2748_v0  ;;  %v1176_v6 = vrot.slane %v1171_v50, %v1175_v3 }
  0xe7   : > { %v2463_v23 = vunpack.i.h.bf16 %v2461_v21  ;;  %v2462_v24 = vunpack.i.l.bf16 %v2461_v21  ;;  %v2466_v25 = vpop.permute.xlu1 %2465  ;;  %v1056_v26 = vpack.c.bf16 %v903_v22, %v877_v20  ;;  %v1977_v21 = vld [vmem:[%s3313_s4] sm:$0xff] }
  0xe8   : > { %v2468_v27 = vunpack.i.h.bf16 %v2466_v25  ;;  %v2467_v28 = vunpack.i.l.bf16 %v2466_v25 }
  0xe9   : > { %1111 = vmatprep.subr.bf16.mxu0 %v1056_v26  ;;  %v876_v29 = vsel %vm875_vm13, %v2462_v24, %v2452_v14  ;;  %v878_v30 = vsel %vm875_vm13, %v2453_v13, %v2463_v23  ;;  %v1180_v14 = vrot.slane %v1171_v50, %v1179_v12 }
  0xea   : > { %v2471_v31 = vpop.permute.xlu0 %2470  ;;  %v902_v32 = vsel %vm901_vm11, %v2467_v28, %v2457_v19  ;;  %v904_v33 = vsel %vm901_vm11, %v2458_v18, %v2468_v27  ;;  %v3097_v18 = vld [vmem:[%s3312_s3] sm:$0xff] }
  0xeb   : > { %v2473_v34 = vunpack.i.h.bf16 %v2471_v31  ;;  %v2472_v35 = vunpack.i.l.bf16 %v2471_v31  ;;  %v924_v36 = vpop.permute.xlu1 %923  ;;  %v1055_v37 = vpack.c.bf16 %v902_v32, %v876_v29  ;;  %v1057_v38 = vpack.c.bf16 %v904_v33, %v878_v30 }
  0xec   : > { %v2171_v19 = vcombine.high %v3097_v18, %v3097_v18 }
  0xed   : > { %v929_v39 = vsel %vm927_vm14, %v2473_v34, %v924_v36  ;;  %1112 = vmatpush1.bf16.msra.mxu0 %v1055_v37  ;;  %1153 = vmatpush1.bf16.msra.mxu1 %v1057_v38  ;;  %v928_v2 = vsel %vm927_vm14, %v2472_v35, %v2473_v34 }
  0xee   : > { %v1059_v40 = vpack.c.bf16 %v929_v39, %v929_v39  ;;  %v926_v41 = vpop.permute.xlu0 %925  ;;  %v1058_v42 = vpack.c.bf16 %v928_v2, %v928_v2  ;;  %1154 = vmatprep.subr.bf16.mxu1 %v2748_v0 }
  0xef   : > { %v930_v43 = vsel %vm927_vm14, %v924_v36, %v926_v41 }
  0xf0   : > { %v1060_v44 = vpack.c.bf16 %v930_v43, %v930_v43  ;;  %2167 = vmatprep.subr.msk.bf16.mxu0 %vm1077_vm15, %v1059_v40  ;;  %v1079_v45 = vsel %vm1077_vm15, %v1058_v42, 0 }
  0xf1   : > { %1114 = vmatpush1.bf16.msra.mxu0 %v1079_v45 }
  0xf2   : > { %v1085_v1 = vsel %vm1077_vm15, %v1060_v44, 0 }
  0xf3   : > { %1155 = vmatpush1.bf16.msra.mxu1 %v1085_v1 }
  0xf4   : > { %1120 = vmatmul.mubr.bf16.vlgmr.msra.gmra.mrb[0].mxu0 %v2165_v5  ;;  %2042 = vmatprep.subr.bf16.mxu1 %v2748_v0 }
  0xf5   : > { %2173 = vmatprep.mubr.msk.bf16.mxu0 %vm1073_vm0, %v2171_v19 }
  0xf6   : > { %1161 = vmatmul.mubr.bf16.vlgmr.msra.gmra.mrb[0].mxu1 %v2165_v5 }
  0xf7   : > { %2174 = vmatprep.mubr.msk.bf16.mxu1 %vm1073_vm0, %v2171_v19  ;;  %vm3363_vm0 = vcmask 80896  }
  0xfc   : > { %v1065_v51 = vpop.permute.xlu1 %1064 }
 0x1c7   : > { %v1121_v49 = vpop.f32.mrb[0].mxu0 }
 0x1c8   : > { %v1123_v52 = vpop.f32.mrb[1].mxu0  ;;  %v1122_v4 = vadd.f32 %v1121_v49, %v1065_v51 }
 0x1c9   : > { %v1162_v53 = vpop.f32.mrb[0].mxu1  ;;  %v1125_v10 = vpop.f32.mrb[2].mxu0  ;;  %v1124_v11 = vadd.f32 %v1123_v52, %v1065_v51 }
 0x1ca   : > { %v1163_v54 = vadd.f32 %v1162_v53, %v1065_v51  ;;  %v1164_v56 = vpop.f32.mrb[1].mxu1  ;;  %v1126_v57 = vpop.f32.mrb[3].mxu0  ;;  %v1168_v7 = vmax.f32 %v1122_v4, 0.0 }
 0x1cb   : > { %v1165_v58 = vpop.f32.mrb[2].mxu1  ;;  %v1169_v13 = vmax.f32 %v1124_v11, 0.0 }
 0x1cc   : > { %v1170_v59 = vmax.f32 %v1163_v54, 0.0  ;;  %v1166_v60 = vpop.f32.mrb[3].mxu1  ;;  %v3046_v8 = vmul.f32 %v1176_v6, %v1168_v7 }
 0x1cd   : > { %v3062_v15 = vmul.f32 %v1180_v14, %v1169_v13 }
 0x1ce   : > { %v3032_v61 = vmul.f32 %v1184_v55, %v1170_v59  ;;  %v2540_v9 = vpack.i.bf16 %v2775_v62, %v3046_v8 }
 0x1cf   : > { %v2600_v16 = vpack.i.bf16 %v3062_v15, %v3046_v8 }
 0x1d0   : > { %v2480_v63 = vpack.i.bf16 %v3032_v61, %v2775_v62  ;;  %v2670_v17 = vpack.i.bf16 %v3032_v61, %v3062_v15  ;;  %v2730_v20 = vpack.i.bf16 %v2775_v62, %v3032_v61 }
 0x1d2   : > { %2481 = vrot.lane.b32.xlu1 %v2480_v63, %s2750_s28  ;;  %2476 = vrot.lane.b32.xlu0 %v2480_v63, %s2749_s27 }
 0x1d6   : > { %2491 = vrot.lane.b32.xlu1 %v2480_v63, %s2752_s30  ;;  %2486 = vrot.lane.b32.xlu0 %v2480_v63, %s2751_s29 }
 0x1da   : > { %2501 = vrot.lane.b32.xlu1 %v2480_v63, %s2754_s8  ;;  %2496 = vrot.lane.b32.xlu0 %v2480_v63, %s2753_s7 }
 0x1de   : > { %2511 = vrot.lane.b32.xlu1 %v2480_v63, %s2756_s10  ;;  %2506 = vrot.lane.b32.xlu0 %v2480_v63, %s2755_s9 }
 0x1e2   : > { %2521 = vrot.lane.b32.xlu1 %v2480_v63, %s2758_s12  ;;  %2516 = vrot.lane.b32.xlu0 %v2480_v63, %s2757_s11 }
 0x1e6   : > { %2531 = vrot.lane.b32.xlu1 %v2480_v63, %s3346_s14  ;;  %2526 = vrot.lane.b32.xlu0 %v2480_v63, %s3347_s13  ;;  %s3354_s14 = smov 38   ;;  %s3355_s13 = smov 37  }
 0x1ea   : > { %2536 = vrot.lane.b32.xlu1 %v2480_v63, %s2761_s15  ;;  %2541 = vrot.lane.b32.xlu0 %v2540_v9, %s3348_s16  ;;  %s3356_s16 = smov 27  }
 0x1ee   : > { %2546 = vrot.lane.b32.xlu1 %v2540_v9, %s3350_s17  ;;  %2551 = vrot.lane.b32.xlu0 %v2540_v9, %s3351_s24 }
 0x1f2   : > { %2556 = vrot.lane.b32.xlu1 %v2540_v9, %s3352_s18  ;;  %2561 = vrot.lane.b32.xlu0 %v2540_v9, %s3353_s20 }
 0x1f6   : > { %2566 = vrot.lane.b32.xlu1 %v2540_v9, %s3354_s14  ;;  %2571 = vrot.lane.b32.xlu0 %v2540_v9, %s3355_s13 }
 0x1fa   : > { %2576 = vrot.lane.b32.xlu1 %v2540_v9, %s2769_s25  ;;  %2581 = vrot.lane.b32.xlu0 %v2540_v9, %s2770_s19 }
 0x1fe   : > { %2586 = vrot.lane.b32.xlu1 %v2540_v9, %s3356_s16  ;;  %2591 = vrot.lane.b32.xlu0 %v2540_v9, %s3349_s23  ;;  %s3357_s23 = smov 9  }
 0x202   : > { %2601 = vrot.lane.b32.xlu1 %v2600_v16, %s2750_s28  ;;  %2596 = vrot.lane.b32.xlu0 %v2600_v16, %s2749_s27  ;;  %s3358_s28 = smov 10   ;;  %s3359_s27 = smov 18  }
 0x206   : > { %2611 = vrot.lane.b32.xlu1 %v2600_v16, %s2752_s30  ;;  %2606 = vrot.lane.b32.xlu0 %v2600_v16, %s2751_s29  ;;  %s3360_s29 = smov 127  }
 0x20a   : > { %2621 = vrot.lane.b32.xlu1 %v2600_v16, %s2754_s8  ;;  %2616 = vrot.lane.b32.xlu0 %v2600_v16, %s2753_s7  ;;  %s3361_s8 = smov 19  }
 0x20e   : > { %2631 = vrot.lane.b32.xlu1 %v2600_v16, %s2756_s10  ;;  %2626 = vrot.lane.b32.xlu0 %v2600_v16, %s2755_s9  ;;  %s3362_s9 = smov 17  }
 0x212   : > { %2641 = vrot.lane.b32.xlu1 %v2600_v16, %s2758_s12  ;;  %2636 = vrot.lane.b32.xlu0 %v2600_v16, %s2757_s11  ;;  %s2182_s12 = smul.u32 12, %s3400_s22 }
 0x216   : > { %2651 = vrot.lane.b32.xlu1 %v2600_v16, %s3357_s23  ;;  %2646 = vrot.lane.b32.xlu0 %v2600_v16, %s3358_s28 }
 0x21a   : > { %2656 = vrot.lane.b32.xlu1 %v2540_v9, %s3359_s27  ;;  %2661 = vrot.lane.b32.xlu0 %v2600_v16, %s2761_s15  ;;  %s251_s15 = scalar_lea.vmem %s3315_s6, %s2182_s12 }
 0x21e   : > { %2671 = vrot.lane.b32.xlu1 %v2670_v17, %s3350_s17  ;;  %2666 = vrot.lane.b32.xlu0 %v2670_v17, %s3360_s29 }
 0x222   : > { %2681 = vrot.lane.b32.xlu1 %v2670_v17, %s3352_s18  ;;  %2676 = vrot.lane.b32.xlu0 %v2670_v17, %s3351_s24 }
 0x226   : > { %2691 = vrot.lane.b32.xlu1 %v2670_v17, %s3354_s14  ;;  %2686 = vrot.lane.b32.xlu0 %v2670_v17, %s3353_s20 }
 0x22a   : > { %2701 = vrot.lane.b32.xlu1 %v2670_v17, %s2769_s25  ;;  %2696 = vrot.lane.b32.xlu0 %v2670_v17, %s3355_s13 }
 0x22e   : > { %2711 = vrot.lane.b32.xlu1 %v2670_v17, %s3356_s16  ;;  %2706 = vrot.lane.b32.xlu0 %v2670_v17, %s2770_s19 }
 0x232   : > { %2721 = vrot.lane.b32.xlu1 %v2670_v17, %s3359_s27  ;;  %2716 = vrot.lane.b32.xlu0 %v2670_v17, %s3361_s8 }
 0x236   : > { %2731 = vrot.lane.b32.xlu1 %v2730_v20, %s3362_s9  ;;  %2726 = vrot.lane.b32.xlu0 %v2600_v16, %s3362_s9 }
 0x23a   : > { %1980 = vperm.xlu0 %2735, %v1977_v21  }
 0x244   : > { %v2482_v22 = vpop.permute.xlu1 %2481  ;;  %v2477_v23 = vpop.permute.xlu0 %2476 }
 0x245   : > { %v2484_v45 = vunpack.i.h.bf16 %v2482_v22  ;;  %v2483_v5 = vunpack.i.l.bf16 %v2482_v22  ;;  %v2479_v1 = vunpack.i.h.bf16 %v2477_v23  ;;  %v2478_v46 = vunpack.i.l.bf16 %v2477_v23 }
 0x248   : > { %v2492_v24 = vpop.permute.xlu1 %2491  ;;  %v3112_v25 = vpop.permute.xlu0 %2486 }
 0x249   : > { %v2494_v47 = vunpack.i.h.bf16 %v2492_v24  ;;  %v2493_v48 = vunpack.i.l.bf16 %v2492_v24  ;;  %v2489_v49 = vunpack.i.h.bf16 %v3112_v25  ;;  %v2488_v50 = vunpack.i.l.bf16 %v3112_v25 }
 0x24c   : > { %v3114_v26 = vpop.permute.xlu1 %2501  ;;  %v3116_v27 = vpop.permute.xlu0 %2496 }
 0x24d   : > { %v2504_v56 = vunpack.i.h.bf16 %v3114_v26  ;;  %v2503_v57 = vunpack.i.l.bf16 %v3114_v26  ;;  %v2499_v58 = vunpack.i.h.bf16 %v3116_v27  ;;  %v2498_v59 = vunpack.i.l.bf16 %v3116_v27 }
 0x250   : > { %v3118_v28 = vpop.permute.xlu1 %2511  ;;  %v3120_v29 = vpop.permute.xlu0 %2506 }
 0x251   : > { %v2514_v19 = vunpack.i.h.bf16 %v3118_v28  ;;  %v2513_v20 = vunpack.i.l.bf16 %v3118_v28  ;;  %v2509_v21 = vunpack.i.h.bf16 %v3120_v29 }
 0x254   : > { %v3122_v30 = vpop.permute.xlu1 %2521  ;;  %v3124_v31 = vpop.permute.xlu0 %2516 }
 0x258   : > { %v3126_v32 = vpop.permute.xlu1 %2531  ;;  %v3128_v33 = vpop.permute.xlu0 %2526 }
 0x25c   : > { %v3130_v34 = vpop.permute.xlu1 %2536  ;;  %v3132_v35 = vpop.permute.xlu0 %2541 }
 0x260   : > { %v3134_v36 = vpop.permute.xlu1 %2546  ;;  %v3136_v37 = vpop.permute.xlu0 %2551 }
 0x264   : > { %v3138_v38 = vpop.permute.xlu1 %2556  ;;  %v3140_v39 = vpop.permute.xlu0 %2561 }
 0x268   : > { %v3142_v2 = vpop.permute.xlu1 %2566  ;;  %v3144_v40 = vpop.permute.xlu0 %2571 }
 0x26c   : > { %v3146_v41 = vpop.permute.xlu1 %2576  ;;  %v3148_v42 = vpop.permute.xlu0 %2581 }
 0x270   : > { %v3150_v43 = vpop.permute.xlu1 %2586  ;;  %v3152_v44 = vpop.permute.xlu0 %2591 }
 0x274   : > { %v2602_v51 = vpop.permute.xlu1 %2601  ;;  %v2597_v52 = vpop.permute.xlu0 %2596 }
 0x275   : > { %v2604_v53 = vunpack.i.h.bf16 %v2602_v51  ;;  %v2603_v10 = vunpack.i.l.bf16 %v2602_v51  ;;  %v2599_v54 = vunpack.i.h.bf16 %v2597_v52  ;;  %v2598_v55 = vunpack.i.l.bf16 %v2597_v52 }
 0x277   : > { %v1237_v60 = vsel %vm297_vm2, %v2604_v53, %v2484_v45  ;;  %v1235_v62 = vsel %vm297_vm2, %v2483_v5, %v2603_v10  ;;  %v1212_v63 = vsel %vm271_vm1, %v2599_v54, %v2479_v1  ;;  %v1210_v3 = vsel %vm271_vm1, %v2478_v46, %v2598_v55 }
 0x278   : > { %v1934_v4 = vpack.c.bf16 %v1237_v60, %v1212_v63  ;;  %v1932_v6 = vpack.c.bf16 %v1235_v62, %v1210_v3  ;;  %v2612_v7 = vpop.permute.xlu1 %2611  ;;  %v2607_v9 = vpop.permute.xlu0 %2606  ;;  %v1211_v11 = vsel %vm271_vm1, %v2598_v55, %v2599_v54  ;;  %v1236_v12 = vsel %vm297_vm2, %v2603_v10, %v2604_v53  ;;  %vm3364_vm1 = vmmov %vm3363_vm0 }
 0x279   : > { %v2614_v13 = vunpack.i.h.bf16 %v2612_v7  ;;  %v2613_v14 = vunpack.i.l.bf16 %v2612_v7  ;;  %v2609_v16 = vunpack.i.h.bf16 %v2607_v9  ;;  %v2608_v17 = vunpack.i.l.bf16 %v2607_v9  ;;  %vm3365_vm2 = vmmov %vm3363_vm0 }
 0x27a   : > { %v1933_v22 = vpack.c.bf16 %v1236_v12, %v1211_v11  ;;  %2043 = vmatpush1.bf16.msra.mxu1 %v1934_v4  ;;  %v2523_v53 = vunpack.i.l.bf16 %v3122_v30  ;;  %v2534_v11 = vunpack.i.h.bf16 %v3126_v32 }
 0x27b   : > { %v1287_v23 = vsel %vm349_vm4, %v2614_v13, %v2494_v47  ;;  %v1285_v24 = vsel %vm349_vm4, %v2493_v48, %v2613_v14  ;;  %v1262_v25 = vsel %vm323_vm3, %v2609_v16, %v2489_v49  ;;  %v1260_v26 = vsel %vm323_vm3, %v2488_v50, %v2608_v17  ;;  %2044 = vmatprep.subr.bf16.mxu1 %v2748_v0 }
 0x27c   : > { %v1937_v27 = vpack.c.bf16 %v1287_v23, %v1262_v25  ;;  %v1935_v45 = vpack.c.bf16 %v1285_v24, %v1260_v26  ;;  %2001 = vmatprep.subr.bf16.mxu0 %v1933_v22  ;;  %v2622_v5 = vpop.permute.xlu1 %2621  ;;  %v2617_v1 = vpop.permute.xlu0 %2616  ;;  %v1261_v28 = vsel %vm323_vm3, %v2608_v17, %v2609_v16  ;;  %v1286_v46 = vsel %vm349_vm4, %v2613_v14, %v2614_v13 }
 0x27d   : > { %2002 = vmatpush1.bf16.msra.mxu0 %v1932_v6  ;;  %v2624_v51 = vunpack.i.h.bf16 %v2622_v5  ;;  %v2623_v47 = vunpack.i.l.bf16 %v2622_v5  ;;  %v2619_v52 = vunpack.i.h.bf16 %v2617_v1  ;;  %v2618_v48 = vunpack.i.l.bf16 %v2617_v1 }
 0x27e   : > { %v2508_v49 = vunpack.i.l.bf16 %v3120_v29  ;;  %v2524_v50 = vunpack.i.h.bf16 %v3122_v30  ;;  %v1936_v10 = vpack.c.bf16 %v1286_v46, %v1261_v28  ;;  %2045 = vmatpush1.bf16.msra.mxu1 %v1937_v27  ;;  %v2529_v5 = vunpack.i.h.bf16 %v3128_v33 }
 0x27f   : > { %v1337_v54 = vsel %vm401_vm6, %v2624_v51, %v2504_v56  ;;  %v1335_v55 = vsel %vm401_vm6, %v2503_v57, %v2623_v47  ;;  %v1312_v60 = vsel %vm375_vm5, %v2619_v52, %v2499_v58  ;;  %v1310_v62 = vsel %vm375_vm5, %v2498_v59, %v2618_v48  ;;  %2046 = vmatprep.subr.bf16.mxu1 %v2748_v0 }
 0x280   : > { %v1940_v63 = vpack.c.bf16 %v1337_v54, %v1312_v60  ;;  %v1938_v3 = vpack.c.bf16 %v1335_v55, %v1310_v62  ;;  %2003 = vmatprep.subr.bf16.mxu0 %v1936_v10  ;;  %v2632_v29 = vpop.permute.xlu1 %2631  ;;  %v2627_v4 = vpop.permute.xlu0 %2626  ;;  %v1311_v6 = vsel %vm375_vm5, %v2618_v48, %v2619_v52  ;;  %v1336_v30 = vsel %vm401_vm6, %v2623_v47, %v2624_v51 }
 0x281   : > { %2004 = vmatpush1.bf16.msra.mxu0 %v1935_v45  ;;  %v2634_v7 = vunpack.i.h.bf16 %v2632_v29  ;;  %v2633_v56 = vunpack.i.l.bf16 %v2632_v29  ;;  %v2629_v9 = vunpack.i.h.bf16 %v2627_v4  ;;  %v2628_v57 = vunpack.i.l.bf16 %v2627_v4 }
 0x282   : > { %v2519_v58 = vunpack.i.h.bf16 %v3124_v31  ;;  %v2518_v59 = vunpack.i.l.bf16 %v3124_v31  ;;  %v1939_v12 = vpack.c.bf16 %v1336_v30, %v1311_v6  ;;  %2047 = vmatpush1.bf16.msra.mxu1 %v1940_v63  ;;  %v2528_v1 = vunpack.i.l.bf16 %v3128_v33 }
 0x283   : > { %v1387_v13 = vsel %vm453_vm8, %v2634_v7, %v2514_v19  ;;  %v1385_v14 = vsel %vm453_vm8, %v2513_v20, %v2633_v56  ;;  %v1362_v16 = vsel %vm427_vm7, %v2629_v9, %v2509_v21  ;;  %v1360_v17 = vsel %vm427_vm7, %v2508_v49, %v2628_v57  ;;  %2048 = vmatprep.subr.bf16.mxu1 %v2748_v0 }
 0x284   : > { %v1943_v22 = vpack.c.bf16 %v1387_v13, %v1362_v16  ;;  %v1941_v23 = vpack.c.bf16 %v1385_v14, %v1360_v17  ;;  %2005 = vmatprep.subr.bf16.mxu0 %v1939_v12  ;;  %v2642_v24 = vpop.permute.xlu1 %2641  ;;  %v2637_v25 = vpop.permute.xlu0 %2636  ;;  %v1361_v31 = vsel %vm427_vm7, %v2628_v57, %v2629_v9  ;;  %v1386_v26 = vsel %vm453_vm8, %v2633_v56, %v2634_v7 }
 0x285   : > { %2006 = vmatpush1.bf16.msra.mxu0 %v1938_v3  ;;  %v2644_v27 = vunpack.i.h.bf16 %v2642_v24  ;;  %v2643_v19 = vunpack.i.l.bf16 %v2642_v24  ;;  %v2639_v45 = vunpack.i.h.bf16 %v2637_v25  ;;  %v2638_v20 = vunpack.i.l.bf16 %v2637_v25 }
 0x286   : > { %v2533_v21 = vunpack.i.l.bf16 %v3126_v32  ;;  %v1942_v28 = vpack.c.bf16 %v1386_v26, %v1361_v31  ;;  %2049 = vmatpush1.bf16.msra.mxu1 %v1943_v22  ;;  %v2539_v62 = vunpack.i.h.bf16 %v3130_v34  ;;  %v2538_v63 = vunpack.i.l.bf16 %v3130_v34 }
 0x287   : > { %v1437_v46 = vsel %vm505_vm10, %v2644_v27, %v2524_v50  ;;  %v1435_v51 = vsel %vm505_vm10, %v2523_v53, %v2643_v19  ;;  %v1412_v47 = vsel %vm479_vm9, %v2639_v45, %v2519_v58  ;;  %v1410_v52 = vsel %vm479_vm9, %v2518_v59, %v2638_v20  ;;  %2050 = vmatprep.subr.bf16.mxu1 %v2748_v0 }
 0x288   : > { %v1946_v48 = vpack.c.bf16 %v1437_v46, %v1412_v47  ;;  %v1944_v49 = vpack.c.bf16 %v1435_v51, %v1410_v52  ;;  %2007 = vmatprep.subr.bf16.mxu0 %v1942_v28  ;;  %v2652_v32 = vpop.permute.xlu1 %2651  ;;  %v2647_v10 = vpop.permute.xlu0 %2646  ;;  %v1411_v54 = vsel %vm479_vm9, %v2638_v20, %v2639_v45  ;;  %v1436_v33 = vsel %vm505_vm10, %v2643_v19, %v2644_v27 }
 0x289   : > { %2008 = vmatpush1.bf16.msra.mxu0 %v1941_v23  ;;  %v2654_v55 = vunpack.i.h.bf16 %v2652_v32  ;;  %v2653_v50 = vunpack.i.l.bf16 %v2652_v32  ;;  %v2649_v60 = vunpack.i.h.bf16 %v2647_v10  ;;  %v2648_v53 = vunpack.i.l.bf16 %v2647_v10 }
 0x28a   : > { %v2544_v3 = vunpack.i.h.bf16 %v3132_v35  ;;  %v1945_v29 = vpack.c.bf16 %v1436_v33, %v1411_v54  ;;  %2051 = vmatpush1.bf16.msra.mxu1 %v1946_v48  ;;  %v2543_v56 = vunpack.i.l.bf16 %v3132_v35  ;;  %v2548_v16 = vunpack.i.l.bf16 %v3134_v36 }
 0x28b   : > { %v1487_v4 = vsel %vm557_vm12, %v2654_v55, %v2534_v11  ;;  %v1485_v6 = vsel %vm557_vm12, %v2533_v21, %v2653_v50  ;;  %v1462_v30 = vsel %vm3363_vm0, %v2649_v60, %v2529_v5  ;;  %v1460_v7 = vsel %vm3364_vm1, %v2528_v1, %v2648_v53  ;;  %2052 = vmatprep.subr.bf16.mxu1 %v2748_v0 }
 0x28c   : > { %v1949_v9 = vpack.c.bf16 %v1487_v4, %v1462_v30  ;;  %2009 = vmatprep.subr.bf16.mxu0 %v1945_v29  ;;  %v3215_v57 = vpop.permute.xlu1 %2656  ;;  %v2662_v34 = vpop.permute.xlu0 %2661  ;;  %v1461_v58 = vsel %vm3365_vm2, %v2648_v53, %v2649_v60  ;;  %v1486_v59 = vsel %vm557_vm12, %v2653_v50, %v2654_v55  ;;  %v2549_v11 = vunpack.i.h.bf16 %v3134_v36 }
 0x28d   : > { %v1947_v12 = vpack.c.bf16 %v1485_v6, %v1460_v7  ;;  %2010 = vmatpush1.bf16.msra.mxu0 %v1944_v49  ;;  %v2664_v13 = vunpack.i.h.bf16 %v2662_v34  ;;  %v2663_v14 = vunpack.i.l.bf16 %v2662_v34  ;;  %v2554_v17 = vunpack.i.h.bf16 %v3136_v37 }
 0x28e   : > { %v2553_v35 = vunpack.i.l.bf16 %v3136_v37  ;;  %v1948_v22 = vpack.c.bf16 %v1486_v59, %v1461_v58  ;;  %2053 = vmatpush1.bf16.msra.mxu1 %v1949_v9  ;;  %v2559_v23 = vunpack.i.h.bf16 %v3138_v38  ;;  %vm3366_vm3 = vcmask 7168  }
 0x28f   : > { %v1512_v24 = vsel %vm3366_vm3, %v2664_v13, %v2539_v62  ;;  %vm3367_vm4 = vmmov %vm3366_vm3  ;;  %2054 = vmatprep.subr.bf16.mxu1 %v2748_v0  ;;  %v2558_v26 = vunpack.i.l.bf16 %v3138_v38  ;;  %v2564_v28 = vunpack.i.h.bf16 %v3140_v39  ;;  %v2563_v46 = vunpack.i.l.bf16 %v3140_v39 }
 0x290   : > { %v1510_v25 = vsel %vm3367_vm4, %v2538_v63, %v2663_v14  ;;  %vm3368_vm5 = vmmov %vm3366_vm3  ;;  %v1952_v36 = vpack.c.bf16 %v3032_v61, %v1512_v24  ;;  %2011 = vmatprep.subr.bf16.mxu0 %v1948_v22  ;;  %v2672_v37 = vpop.permute.xlu1 %2671  ;;  %v2667_v19 = vpop.permute.xlu0 %2666  ;;  %v2569_v38 = vunpack.i.h.bf16 %v3142_v2  ;;  %v2568_v61 = vunpack.i.l.bf16 %v3142_v2 }
 0x291   : > { %v1511_v31 = vsel %vm3368_vm5, %v2663_v14, %v2664_v13  ;;  %v1950_v27 = vpack.c.bf16 %v3046_v8, %v1510_v25  ;;  %2012 = vmatpush1.bf16.msra.mxu0 %v1947_v12  ;;  %v2674_v20 = vunpack.i.h.bf16 %v2672_v37  ;;  %v2673_v21 = vunpack.i.l.bf16 %v2672_v37 }
 0x292   : > { %v1951_v45 = vpack.c.bf16 %v3062_v15, %v1511_v31  ;;  %v2669_v5 = vunpack.i.h.bf16 %v2667_v19  ;;  %v2668_v1 = vunpack.i.l.bf16 %v2667_v19  ;;  %2055 = vmatpush1.bf16.msra.mxu1 %v1952_v36  ;;  %vm3369_vm6 = vcmask 973824  }
 0x293   : > { %v1566_v8 = vsel %vm3369_vm6, %v2548_v16, %v2673_v21  ;;  %vm3370_vm7 = vmmov %vm3369_vm6  ;;  %vm3371_vm8 = vcmask 1039360   ;;  %2056 = vmatprep.subr.bf16.mxu1 %v2748_v0  ;;  %v2574_v50 = vunpack.i.h.bf16 %v3144_v40  ;;  %v2573_v60 = vunpack.i.l.bf16 %v3144_v40 }
 0x294   : > { %2013 = vmatprep.subr.bf16.mxu0 %v1951_v45  ;;  %v1568_v51 = vsel %vm3370_vm7, %v2674_v20, %v2549_v11  ;;  %v1541_v15 = vsel %vm3371_vm8, %v2543_v56, %v2668_v1  ;;  %vm3372_vm9 = vmmov %vm3371_vm8  ;;  %v2682_v49 = vpop.permute.xlu1 %2681  ;;  %v2677_v39 = vpop.permute.xlu0 %2676  ;;  %v2579_v53 = vunpack.i.h.bf16 %v3146_v41  ;;  %vm3375_vm0 = vcmask 957440  }
 0x295   : > { %v1543_v47 = vsel %vm3372_vm9, %v2669_v5, %v2544_v3  ;;  %v1953_v52 = vpack.c.bf16 %v1566_v8, %v1541_v15  ;;  %vm3373_vm10 = vmmov %vm3371_vm8  ;;  %2014 = vmatpush1.bf16.msra.mxu0 %v1950_v27  ;;  %v2684_v10 = vunpack.i.h.bf16 %v2682_v49  ;;  %v2683_v54 = vunpack.i.l.bf16 %v2682_v49 }
 0x296   : > { %v1955_v48 = vpack.c.bf16 %v1568_v51, %v1543_v47  ;;  %v1542_v32 = vsel %vm3373_vm10, %v2668_v1, %v2669_v5  ;;  %vm3374_vm12 = vmmov %vm3369_vm6  ;;  %v2679_v33 = vunpack.i.h.bf16 %v2677_v39  ;;  %v2678_v55 = vunpack.i.l.bf16 %v2677_v39 }
 0x297   : > { %v1567_v2 = vsel %vm3374_vm12, %v2673_v21, %v2674_v20  ;;  %v1616_v63 = vsel %vm3375_vm0, %v2558_v26, %v2683_v54  ;;  %vm3376_vm1 = vmmov %vm3375_vm0  ;;  %vm3377_vm2 = vcmask 965632   ;;  %v2578_v12 = vunpack.i.l.bf16 %v3146_v41 }
 0x298   : > { %v1954_v62 = vpack.c.bf16 %v1567_v2, %v1542_v32  ;;  %2057 = vmatpush1.bf16.msra.mxu1 %v1955_v48  ;;  %v1618_v3 = vsel %vm3376_vm1, %v2684_v10, %v2559_v23  ;;  %v1591_v29 = vsel %vm3377_vm2, %v2553_v35, %v2678_v55  ;;  %vm3378_vm3 = vmmov %vm3377_vm2  ;;  %v2692_v7 = vpop.permute.xlu1 %2691  ;;  %v2687_v56 = vpop.permute.xlu0 %2686  ;;  %v2584_v13 = vunpack.i.h.bf16 %v3148_v42 }
 0x299   : > { %v1593_v4 = vsel %vm3378_vm3, %v2679_v33, %v2554_v17  ;;  %2058 = vmatprep.subr.bf16.mxu1 %v2748_v0  ;;  %v1956_v6 = vpack.c.bf16 %v1616_v63, %v1591_v29  ;;  %vm3379_vm4 = vmmov %vm3377_vm2  ;;  %v2694_v34 = vunpack.i.h.bf16 %v2692_v7  ;;  %v2693_v58 = vunpack.i.l.bf16 %v2692_v7 }
 0x29a   : > { %v1958_v30 = vpack.c.bf16 %v1618_v3, %v1593_v4  ;;  %2015 = vmatprep.subr.bf16.mxu0 %v1954_v62  ;;  %v1592_v40 = vsel %vm3379_vm4, %v2678_v55, %v2679_v33  ;;  %vm3380_vm5 = vmmov %vm3375_vm0  ;;  %v2689_v59 = vunpack.i.h.bf16 %v2687_v56  ;;  %v2688_v11 = vunpack.i.l.bf16 %v2687_v56 }
 0x29b   : > { %v1617_v9 = vsel %vm3380_vm5, %v2683_v54, %v2684_v10  ;;  %2016 = vmatpush1.bf16.msra.mxu0 %v1953_v52  ;;  %v2583_v14 = vunpack.i.l.bf16 %v3148_v42  ;;  %vm3381_vm6 = vcmask 310272   ;;  %vm3383_vm8 = vcmask 318464  }
 0x29c   : > { %v1957_v16 = vpack.c.bf16 %v1617_v9, %v1592_v40  ;;  %2059 = vmatpush1.bf16.msra.mxu1 %v1958_v30  ;;  %v1666_v17 = vsel %vm3381_vm6, %v2568_v61, %v2693_v58  ;;  %vm3382_vm7 = vmmov %vm3381_vm6  ;;  %v1641_v22 = vsel %vm3383_vm8, %v2563_v46, %v2688_v11  ;;  %v2702_v41 = vpop.permute.xlu1 %2701  ;;  %v2697_v31 = vpop.permute.xlu0 %2696  ;;  %v2589_v45 = vunpack.i.h.bf16 %v3150_v43 }
 0x29d   : > { %v1668_v35 = vsel %vm3382_vm7, %v2694_v34, %v2569_v38  ;;  %vm3384_vm9 = vmmov %vm3383_vm8  ;;  %2060 = vmatprep.subr.bf16.mxu1 %v2748_v0  ;;  %v1959_v24 = vpack.c.bf16 %v1666_v17, %v1641_v22  ;;  %v2704_v36 = vunpack.i.h.bf16 %v2702_v41  ;;  %v2703_v27 = vunpack.i.l.bf16 %v2702_v41 }
 0x29e   : > { %v1643_v23 = vsel %vm3384_vm9, %v2689_v59, %v2564_v28  ;;  %2017 = vmatprep.subr.bf16.mxu0 %v1957_v16  ;;  %vm3385_vm10 = vmmov %vm3383_vm8  ;;  %v2699_v37 = vunpack.i.h.bf16 %v2697_v31  ;;  %v2698_v19 = vunpack.i.l.bf16 %v2697_v31  ;;  %v2588_v20 = vunpack.i.l.bf16 %v3150_v43 }
 0x29f   : > { %v1961_v25 = vpack.c.bf16 %v1668_v35, %v1643_v23  ;;  %v1642_v26 = vsel %vm3385_vm10, %v2688_v11, %v2689_v59  ;;  %vm3386_vm12 = vmmov %vm3381_vm6  ;;  %2018 = vmatpush1.bf16.msra.mxu0 %v1956_v6  ;;  %v2594_v21 = vunpack.i.h.bf16 %v3152_v44  ;;  %vm3387_vm0 = vcmask 236544  }
 0x2a0   : > { %v1667_v42 = vsel %vm3386_vm12, %v2693_v58, %v2694_v34  ;;  %v1716_v1 = vsel %vm3387_vm0, %v2578_v12, %v2703_v27  ;;  %vm3388_vm1 = vmmov %vm3387_vm0  ;;  %vm3389_vm2 = vcmask 302080   ;;  %v2712_v51 = vpop.permute.xlu1 %2711  ;;  %v2707_v15 = vpop.permute.xlu0 %2706  ;;  %v2593_v32 = vunpack.i.l.bf16 %v3152_v44 }
 0x2a1   : > { %v1960_v5 = vpack.c.bf16 %v1667_v42, %v1642_v26  ;;  %2061 = vmatpush1.bf16.msra.mxu1 %v1961_v25  ;;  %v1718_v28 = vsel %vm3388_vm1, %v2704_v36, %v2579_v53  ;;  %v1691_v46 = vsel %vm3389_vm2, %v2573_v60, %v2698_v19  ;;  %vm3390_vm3 = vmmov %vm3389_vm2  ;;  %v2714_v52 = vunpack.i.h.bf16 %v2712_v51 }
 0x2a2   : > { %v1693_v38 = vsel %vm3390_vm3, %v2699_v37, %v2574_v50  ;;  %2062 = vmatprep.subr.bf16.mxu1 %v2748_v0  ;;  %v1962_v61 = vpack.c.bf16 %v1716_v1, %v1691_v46  ;;  %vm3391_vm4 = vmmov %vm3389_vm2  ;;  %v2713_v48 = vunpack.i.l.bf16 %v2712_v51  ;;  %v2709_v49 = vunpack.i.h.bf16 %v2707_v15 }
 0x2a3   : > { %v1964_v8 = vpack.c.bf16 %v1718_v28, %v1693_v38  ;;  %2019 = vmatprep.subr.bf16.mxu0 %v1960_v5  ;;  %v1692_v43 = vsel %vm3391_vm4, %v2698_v19, %v2699_v37  ;;  %vm3392_vm5 = vmmov %vm3387_vm0  ;;  %v2708_v39 = vunpack.i.l.bf16 %v2707_v15  ;;  %v2659_v2 = vunpack.i.h.bf16 %v3215_v57  ;;  %v1976_v19 = vld [vmem:[%s2825_s26 + $0x18] sm:$0xff]  ;;  %v1974_v5 = vld [vmem:[%s2825_s26 + $0x8] sm:$0xff] }
 0x2a4   : > { %v1717_v47 = vsel %vm3392_vm5, %v2703_v27, %v2704_v36  ;;  %2020 = vmatpush1.bf16.msra.mxu0 %v1959_v24  ;;  %v2658_v10 = vunpack.i.l.bf16 %v3215_v57  ;;  %vm3393_vm6 = vcmask 220160   ;;  %vm3395_vm8 = vcmask 228352   ;;  %v2722_v44 = vpop.permute.xlu1 %2721  ;;  %v2717_v63 = vpop.permute.xlu0 %2716 }
 0x2a5   : > { %v1963_v54 = vpack.c.bf16 %v1717_v47, %v1692_v43  ;;  %2063 = vmatpush1.bf16.msra.mxu1 %v1964_v8  ;;  %v1766_v33 = vsel %vm3393_vm6, %v2588_v20, %v2713_v48  ;;  %vm3394_vm7 = vmmov %vm3393_vm6  ;;  %v1741_v50 = vsel %vm3395_vm8, %v2583_v14, %v2708_v39  ;;  %v2724_v29 = vunpack.i.h.bf16 %v2722_v44 }
 0x2a6   : > { %v1768_v55 = vsel %vm3394_vm7, %v2714_v52, %v2589_v45  ;;  %vm3396_vm9 = vmmov %vm3395_vm8  ;;  %2064 = vmatprep.subr.bf16.mxu1 %v2748_v0  ;;  %v1965_v53 = vpack.c.bf16 %v1766_v33, %v1741_v50  ;;  %v2723_v4 = vunpack.i.l.bf16 %v2722_v44  ;;  %v2719_v6 = vunpack.i.h.bf16 %v2717_v63 }
 0x2a7   : > { %v1743_v60 = vsel %vm3396_vm9, %v2709_v49, %v2584_v13  ;;  %2021 = vmatprep.subr.bf16.mxu0 %v1963_v54  ;;  %vm3397_vm10 = vmmov %vm3395_vm8  ;;  %v2718_v30 = vunpack.i.l.bf16 %v2717_v63  ;;  %v1818_v40 = vsel %vm901_vm11, %v2724_v29, %v2659_v2  ;;  %v2170_v37 = vcombine.low %v3097_v18, %v3097_v18 }
 0x2a8   : > { %v1967_v62 = vpack.c.bf16 %v1768_v55, %v1743_v60  ;;  %v1742_v3 = vsel %vm3397_vm10, %v2708_v39, %v2709_v49  ;;  %vm3398_vm12 = vmmov %vm3393_vm6  ;;  %2022 = vmatpush1.bf16.msra.mxu0 %v1962_v61  ;;  %v1816_v56 = vsel %vm901_vm11, %v2658_v10, %v2723_v4  ;;  %v1793_v34 = vsel %vm875_vm13, %v2719_v6, %v2594_v21  ;;  %v2732_v11 = vpop.permute.xlu1 %2731  ;;  %v2727_v12 = vpop.permute.xlu0 %2726  ;;  %v1975_v61 = vld [vmem:[%s2825_s26 + $0x10] sm:$0xff] }
 0x2a9   : > { %v1767_v57 = vsel %vm3398_vm12, %v2713_v48, %v2714_v52  ;;  %v1791_v9 = vsel %vm875_vm13, %v2593_v32, %v2718_v30  ;;  %v1970_v59 = vpack.c.bf16 %v1818_v40, %v1793_v34  ;;  %v1792_v13 = vsel %vm875_vm13, %v2718_v30, %v2719_v6 }
 0x2aa   : > { %v1966_v7 = vpack.c.bf16 %v1767_v57, %v1742_v3  ;;  %2065 = vmatpush1.bf16.msra.mxu1 %v1967_v62  ;;  %v1968_v58 = vpack.c.bf16 %v1816_v56, %v1791_v9  ;;  %v1817_v14 = vsel %vm901_vm11, %v2723_v4, %v2724_v29  ;;  %v2734_v16 = vunpack.i.h.bf16 %v2732_v11 }
 0x2ab   : > { %2066 = vmatprep.subr.bf16.mxu1 %v2748_v0  ;;  %v2733_v17 = vunpack.i.l.bf16 %v2732_v11  ;;  %v2729_v35 = vunpack.i.h.bf16 %v2727_v12  ;;  %v2728_v22 = vunpack.i.l.bf16 %v2727_v12  ;;  %v1969_v23 = vpack.c.bf16 %v1817_v14, %v1792_v13 }
 0x2ac   : > { %2023 = vmatprep.subr.bf16.mxu0 %v1966_v7 }
 0x2ad   : > { %2024 = vmatpush1.bf16.msra.mxu0 %v1965_v53  ;;  %v1843_v24 = vsel %vm927_vm14, %v2733_v17, %v2734_v16  ;;  %v1842_v25 = vsel %vm927_vm14, %v2729_v35, %v2733_v17  ;;  %v1841_v41 = vsel %vm927_vm14, %v2728_v22, %v2729_v35 }
 0x2ae   : > { %2067 = vmatpush1.bf16.msra.mxu1 %v1970_v59  ;;  %v1973_v31 = vpack.c.bf16 %v1843_v24, %v1843_v24  ;;  %v1972_v26 = vpack.c.bf16 %v1842_v25, %v1842_v25  ;;  %2025 = vmatprep.subr.bf16.mxu0 %v1969_v23  ;;  %v1971_v42 = vpack.c.bf16 %v1841_v41, %v1841_v41 }
 0x2af   : > { %2068 = vmatprep.subr.bf16.mxu1 %v2748_v0 }
 0x2b0   : > { %v1993_v36 = vsel %vm1077_vm15, %v1971_v42, 0  ;;  %v1999_v27 = vsel %vm1077_vm15, %v1973_v31, 0 }
 0x2b1   : > { %2026 = vmatpush1.bf16.msra.mxu0 %v1968_v58 }
 0x2b2   : > { %2172 = vmatprep.subr.msk.bf16.mxu0 %vm1077_vm15, %v1972_v26  ;;  %2069 = vmatpush1.bf16.msra.mxu1 %v1999_v27 }
 0x2b5   : > { %2028 = vmatpush1.bf16.msra.mxu0 %v1993_v36  ;;  %2075 = vmatmul.mubr.bf16.vlgmr.msra.gmra.mrb[4].mxu1 %v2170_v37 }
 0x2b8   : > { %2034 = vmatmul.mubr.bf16.vlgmr.msra.gmra.mrb[4].mxu0 %v2170_v37 }
 0x2b9   : > { %v1981_v0 = vpop.permute.xlu0 %1980 }
 0x388   : > { %v2076_v45 = vpop.f32.mrb[4].mxu1 }
 0x389   : > { %v2077_v20 = vadd.f32 %v2076_v45, %v1981_v0  ;;  %v2078_v21 = vpop.f32.mrb[5].mxu1 }
 0x38a   : > { %v2079_v28 = vpop.f32.mrb[6].mxu1 }
 0x38b   : > { %v2035_v1 = vpop.f32.mrb[4].mxu0  ;;  %v2084_v38 = vadd.f32 %v2077_v20, %v1976_v19  ;;  %v2080_v51 = vpop.f32.mrb[7].mxu1 }
 0x38c   : > { %v2036_v46 = vadd.f32 %v2035_v1, %v1981_v0  ;;  %v2037_v8 = vpop.f32.mrb[5].mxu0 }
 0x38d   : > { %v2038_v18 = vadd.f32 %v2037_v8, %v1981_v0  ;;  %v2039_v15 = vpop.f32.mrb[6].mxu0  ;;  %v2087_v47 = vmax.f32 %v2084_v38, 0.0 }
 0x38e   : > { %v2082_v43 = vadd.f32 %v2036_v46, %v1974_v5  ;;  %v2040_v52 = vpop.f32.mrb[7].mxu0 }
 0x38f   : > { %v2083_v48 = vadd.f32 %v2038_v18, %v1975_v61  ;;  %v2180_v39 = vpack.c.bf16 %v2087_v47, %v2087_v47 }
 0x390   : > { %v2085_v49 = vmax.f32 %v2082_v43, 0.0 }
 0x391   : > { %v2086_v32 = vmax.f32 %v2083_v48, 0.0  ;;  %2102 = vst [vmem:[%s251_s15 + $0x8] sm:$0xf] %v2180_v39 }
 0x393   : > { %v2179_v2 = vpack.c.bf16 %v2086_v32, %v2085_v49 }
 0x395   : > { %2101 = vst [vmem:[%s251_s15] sm:$0xff] %v2179_v2 }
 0x396 PF: > { %s16_s21 = sadd.s32 1, %s2746_s21  }
 0x397   : > { %p13_p4 = scmp.ge.s32.totalorder %s16_s21, 4  }
 0x399   :  { %15 = sbr.rel (!%p13_p4) target bundleno = 1 (0x1), region = 74 }

</bundles_post_ra>
